<compile_context>
chip_gen: v6e
topology: v6e:2x2x1
jax: 0.10.0
libtpu: 0.0.40
codegen_flags: <defaults>
</compile_context>

<pallas_src>
import functools

import jax
import jax.numpy as jnp
from jax import lax
from jax.experimental import pallas as pl
from jax.experimental.pallas import tpu as pltpu


def _round_up(x, m):
    return (x + m - 1) // m * m


def gru_chunk_kernel(x_ref, h0_ref, wx_ref, bx_ref, wzr_ref, whh_ref,
                     out_ref, h_scr, gx_scr, *, tc, h_pad, t_total):
    """One grid step processes `tc` timesteps; hidden state carried in VMEM scratch."""
    c = pl.program_id(0)

    @pl.when(c == 0)
    def _():
        h_scr[...] = h0_ref[...]

    # ---- x-side gate pre-activations for the whole chunk: one lane-dense MXU
    # pass + fused bias, OFF the serial recurrence path (the MXU is otherwise
    # idle waiting on the h dependency).
    b_pad = x_ref.shape[1]
    e_pad = x_ref.shape[2]
    x_flat = x_ref[...].reshape(tc * b_pad, e_pad)
    gx = jnp.dot(x_flat, wx_ref[...],
                 preferred_element_type=jnp.float32) + bx_ref[...]
    gx_scr[...] = gx.reshape(tc, b_pad, 3 * h_pad)

    def cell(gx_s, h):
        # z and r from one fused (B, 2H) hidden matmul and one EUP tanh.
        zr_pre = gx_s[:, :2 * h_pad] + jnp.dot(
            h, wzr_ref[...], preferred_element_type=jnp.float32)
        zr = 0.5 * (jnp.tanh(0.5 * zr_pre) + 1.0)        # sigmoid via tanh
        z = zr[:, :h_pad]
        r = zr[:, h_pad:]
        # candidate state: tanh(gh + (r*h) @ Whh)   (exact PyTorch-cell semantics)
        h_cand = jnp.tanh(
            gx_s[:, 2 * h_pad:] + jnp.dot(
                r * h, whh_ref[...], preferred_element_type=jnp.float32))
        return h + z * (h_cand - h)                       # == (1-z)*h + z*h_cand

    unroll = tc if tc <= 8 else 8                          # cap code bloat / vreg pressure

    if t_total % tc == 0:
        # No padded timesteps anywhere: carry h in registers through the loop.
        def step(s, h):
            h_new = cell(gx_scr[s], h)
            out_ref[s] = h_new                             # lane-dense store (H_pad=128)
            return h_new

        h_scr[...] = lax.fori_loop(0, tc, step, h_scr[...], unroll=unroll)
    else:
        # Trailing padded timesteps exist: predicate them away so the serial
        # 2-matmul + tanh chain never executes for discarded outputs.
        @pl.loop(0, tc)
        def _(s):
            @pl.when(c * tc + s < t_total)
            def _():
                h_new = cell(gx_scr[s], h_scr[...])
                out_ref[s] = h_new
                h_scr[...] = h_new


def gru_forward(x_emb, h0, params, *, tc=None):
    """x_emb: (T, B, E) f32, h0: (B, H) f32 -> (T, B, H) f32."""
    T, B, E = x_emb.shape
    H = h0.shape[1]

    B_pad = _round_up(max(B, 8), 8)          # sublane width
    H_pad = _round_up(max(H, 128), 128)      # lane width
    E_pad = _round_up(max(E, 8), 8)
    if tc is None:
        tc = min(32, T)                      # timesteps per grid step
    T_pad = _round_up(T, tc)

    # ---- pre-packed, lane-padded weights (done once; no per-gate slice/concat
    # passes over (T,B,3H) data).  Pad rows/columns are zero, so padded E/H
    # lanes never contribute to real lanes.
    wx_pad = jnp.zeros((E_pad, 3 * H_pad), jnp.float32)
    wx_pad = wx_pad.at[:E, 0:H].set(params["wzx"])
    wx_pad = wx_pad.at[:E, H_pad:H_pad + H].set(params["wrx"])
    wx_pad = wx_pad.at[:E, 2 * H_pad:2 * H_pad + H].set(params["whx"])

    bx_pad = jnp.zeros((1, 3 * H_pad), jnp.float32)
    bx_pad = bx_pad.at[:, 0:H].set(params["bz"])
    bx_pad = bx_pad.at[:, H_pad:H_pad + H].set(params["br"])
    bx_pad = bx_pad.at[:, 2 * H_pad:2 * H_pad + H].set(params["bh"])

    wzr_pad = jnp.zeros((H_pad, 2 * H_pad), jnp.float32)
    wzr_pad = wzr_pad.at[:H, :H].set(params["wzh"])
    wzr_pad = wzr_pad.at[:H, H_pad:H_pad + H].set(params["wrh"])
    whh_pad = jnp.zeros((H_pad, H_pad), jnp.float32)
    whh_pad = whh_pad.at[:H, :H].set(params["whh"])

    x_pad = jnp.pad(x_emb, ((0, T_pad - T), (0, B_pad - B), (0, E_pad - E)))
    h0_pad = jnp.pad(h0, ((0, B_pad - B), (0, H_pad - H)))

    kernel = functools.partial(gru_chunk_kernel, tc=tc, h_pad=H_pad, t_total=T)

    out_pad = pl.pallas_call(
        kernel,
        out_shape=jax.ShapeDtypeStruct((T_pad, B_pad, H_pad), jnp.float32),
        grid_spec=pltpu.PrefetchScalarGridSpec(
            num_scalar_prefetch=0,
            grid=(T_pad // tc,),
            in_specs=[
                pl.BlockSpec((tc, B_pad, E_pad), lambda c: (c, 0, 0)),   # x_emb chunk
                pl.BlockSpec((B_pad, H_pad), lambda c: (0, 0)),          # h0
                pl.BlockSpec((E_pad, 3 * H_pad), lambda c: (0, 0)),      # [Wzx|Wrx|Whx]
                pl.BlockSpec((1, 3 * H_pad), lambda c: (0, 0)),          # fused bias
                pl.BlockSpec((H_pad, 2 * H_pad), lambda c: (0, 0)),      # [Wzh|Wrh]
                pl.BlockSpec((H_pad, H_pad), lambda c: (0, 0)),          # Whh
            ],
            out_specs=pl.BlockSpec((tc, B_pad, H_pad), lambda c: (c, 0, 0)),
            scratch_shapes=[
                pltpu.VMEM((B_pad, H_pad), jnp.float32),                 # carried h
                pltpu.VMEM((tc, B_pad, 3 * H_pad), jnp.float32),         # chunk gx
            ],
        ),
        compiler_params=pltpu.CompilerParams(
            dimension_semantics=("arbitrary",),   # recurrence: must run sequentially
            # At scaled-up H/tc, budget VMEM explicitly: ~2*tc*B_pad*(E_pad+H_pad)*4
            # (double-buffered x/out) + (E_pad*3H_pad + 3*H_pad^2)*4 resident weights
            # + tc*B_pad*3H_pad*4 gx scratch; keep under v7x's 64 MiB.
        ),
    )(x_pad, h0_pad, wx_pad, bx_pad, wzr_pad, whh_pad)

    return out_pad[:T, :B, :H]


def init_params(key, dico_size, latent_size, emb_size):
    """Deterministic synthetic parameters matching the PyTorch module's shapes.

    nn.Linear(E+H, H) has weight (H, E+H), bias (H,). We store the transposed
    weight split into an (E, H) input part and an (H, H) hidden part so that
    cat(x, h) @ W.T == x @ Wx + h @ Wh.
    """
    ks = jax.random.split(key, 8)
    E, H, V = emb_size, latent_size, dico_size
    scale = 0.1
    emb = jax.random.normal(ks[0], (V, E), jnp.float32) * scale

    def linear(k):
        kw, kb = jax.random.split(k)
        w = jax.random.normal(kw, (E + H, H), jnp.float32) * scale  # = W.T
        b = jax.random.normal(kb, (1, H), jnp.float32) * scale
        return w[:E], w[E:], b

    wzx, wzh, bz = linear(ks[1])
    wrx, wrh, br = linear(ks[2])
    whx, whh, bh = linear(ks[3])
    # decoder (not used by forward(); kept for shape parity with the module)
    dec_w = jax.random.normal(ks[4], (H, V), jnp.float32) * scale
    dec_b = jax.random.normal(ks[5], (1, V), jnp.float32) * scale
    return dict(emb=emb,
                wzx=wzx, wzh=wzh, bz=bz,
                wrx=wrx, wrh=wrh, br=br,
                whx=whx, whh=whh, bh=bh,
                dec_w=dec_w, dec_b=dec_b)


def gru_reference(x_emb, h0, p):
    """Pure-JAX reference replicating the PyTorch module's forward loop."""
    def step(h, x):
        z = jax.nn.sigmoid(x @ p["wzx"] + h @ p["wzh"] + p["bz"])
        r = jax.nn.sigmoid(x @ p["wrx"] + h @ p["wrh"] + p["br"])
        hc = jnp.tanh(x @ p["whx"] + (r * h) @ p["whh"] + p["bh"])
        h_new = (1 - z) * h + z * hc
        return h_new, h_new
    _, outs = jax.lax.scan(step, h0, x_emb)
    return outs


if __name__ == "__main__":
    dico_size, latent_size, emb_size = 50, 32, 16
    T, B = 8, 2

    key = jax.random.PRNGKey(0)
    kp, kx, kh = jax.random.split(key, 3)
    params = init_params(kp, dico_size, latent_size, emb_size)

    x_tokens = jax.random.randint(kx, (T, B), 0, dico_size, dtype=jnp.int32)
    h0 = jax.random.normal(kh, (B, latent_size), jnp.float32) * 0.1

    # Embedding lookup (data-dependent gather) kept as plain-JAX glue.
    x_emb = params["emb"][x_tokens]                      # (T, B, E)

    out = gru_forward(x_emb, h0, params)
    out = jax.block_until_ready(out)

    ref = gru_reference(x_emb, h0, params)
    assert out.shape == (T, B, latent_size)
    assert jnp.allclose(out, ref, atol=1e-4, rtol=1e-4), "mismatch vs reference"

    print("KERNEL_OK")
</pallas_src>

<mosaic_0001>
module attributes {stable_mosaic.version = 11 : i64} {
  func.func @gru_chunk_kernel(%arg0: i32, %arg1: memref<8x8x16xf32, #tpu.memory_space<vmem>>, %arg2: memref<8x128xf32, #tpu.memory_space<vmem>>, %arg3: memref<16x384xf32, #tpu.memory_space<vmem>>, %arg4: memref<1x384xf32, #tpu.memory_space<vmem>>, %arg5: memref<128x256xf32, #tpu.memory_space<vmem>>, %arg6: memref<128x128xf32, #tpu.memory_space<vmem>>, %arg7: memref<8x8x128xf32, #tpu.memory_space<vmem>>, %arg8: memref<8x128xf32, #tpu.memory_space<vmem>>, %arg9: memref<8x8x384xf32, #tpu.memory_space<vmem>>) attributes {dimension_semantics = [#tpu.dimension_semantics<arbitrary>], iteration_bounds = array<i64: 1>, scalar_prefetch = 0 : i64, scratch_operands = 2 : i64, tpu.core_type = #tpu.core_type<tc>, window_params = [{transform_indices = @transform_0, window_bounds = array<i64: 8, 8, 16>}, {pipeline_mode = #tpu.pipeline_mode<synchronous>, transform_indices = @transform_1, window_bounds = array<i64: 8, 128>}, {pipeline_mode = #tpu.pipeline_mode<synchronous>, transform_indices = @transform_2, window_bounds = array<i64: 16, 384>}, {pipeline_mode = #tpu.pipeline_mode<synchronous>, transform_indices = @transform_3, window_bounds = array<i64: 1, 384>}, {pipeline_mode = #tpu.pipeline_mode<synchronous>, transform_indices = @transform_4, window_bounds = array<i64: 128, 256>}, {pipeline_mode = #tpu.pipeline_mode<synchronous>, transform_indices = @transform_5, window_bounds = array<i64: 128, 128>}, {transform_indices = @transform_6, window_bounds = array<i64: 8, 8, 128>}]} {
    %c0_i32 = arith.constant 0 : i32
    %0 = arith.cmpi eq, %arg0, %c0_i32 : i32
    %1 = arith.extui %0 : i1 to i32
    %c0_i32_0 = arith.constant 0 : i32
    %2 = arith.cmpi ne, %1, %c0_i32_0 : i32
    scf.if %2 {
      %c0_119 = arith.constant 0 : index
      %c0_120 = arith.constant 0 : index
      %246 = vector.load %arg2[%c0_119, %c0_120] : memref<8x128xf32, #tpu.memory_space<vmem>>, vector<8x128xf32>
      %c0_121 = arith.constant 0 : index
      %c0_122 = arith.constant 0 : index
      %247 = vector.load %arg8[%c0_121, %c0_122] : memref<8x128xf32, #tpu.memory_space<vmem>>, vector<8x128xf32>
      tpu.vector_store %arg8[%c0_121, %c0_122], %246 {strides = array<i32>} : memref<8x128xf32, #tpu.memory_space<vmem>>, vector<8x128xf32>,
    } else {
    }
    %c0 = arith.constant 0 : index
    %c0_1 = arith.constant 0 : index
    %c0_2 = arith.constant 0 : index
    %3 = vector.load %arg1[%c0, %c0_1, %c0_2] : memref<8x8x16xf32, #tpu.memory_space<vmem>>, vector<8x8x16xf32>
    %4 = vector.shape_cast %3 : vector<8x8x16xf32> to vector<64x16xf32>
    %c0_3 = arith.constant 0 : index
    %c0_4 = arith.constant 0 : index
    %5 = vector.load %arg3[%c0_3, %c0_4] : memref<16x384xf32, #tpu.memory_space<vmem>>, vector<16x384xf32>
    %cst = arith.constant dense<0.000000e+00> : vector<64x384xf32>
    %6 = tpu.matmul %4, %5, %cst {dimension_numbers = #tpu.dot_dimension_numbers<[1], [0], [0], [1], [0, 0, 1, 1], [], []>} : vector<64x16xf32>, vector<16x384xf32>, vector<64x384xf32> -> vector<64x384xf32>
    %c0_5 = arith.constant 0 : index
    %c0_6 = arith.constant 0 : index
    %7 = vector.load %arg4[%c0_5, %c0_6] : memref<1x384xf32, #tpu.memory_space<vmem>>, vector<1x384xf32>
    %8 = vector.broadcast %7 : vector<1x384xf32> to vector<64x384xf32>
    %9 = arith.addf %6, %8 : vector<64x384xf32>
    %10 = vector.shape_cast %9 : vector<64x384xf32> to vector<8x8x384xf32>
    %c0_7 = arith.constant 0 : index
    %c0_8 = arith.constant 0 : index
    %c0_9 = arith.constant 0 : index
    %11 = vector.load %arg9[%c0_7, %c0_8, %c0_9] : memref<8x8x384xf32, #tpu.memory_space<vmem>>, vector<8x8x384xf32>
    tpu.vector_store %arg9[%c0_7, %c0_8, %c0_9], %10 {strides = array<i32>} : memref<8x8x384xf32, #tpu.memory_space<vmem>>, vector<8x8x384xf32>,
    %c0_10 = arith.constant 0 : index
    %c0_11 = arith.constant 0 : index
    %12 = vector.load %arg8[%c0_10, %c0_11] : memref<8x128xf32, #tpu.memory_space<vmem>>, vector<8x128xf32>
    %c0_i32_12 = arith.constant 0 : i32
    %13 = arith.index_cast %c0_i32_12 : i32 to index
    %c0_13 = arith.constant 0 : index
    %c0_14 = arith.constant 0 : index
    %14 = vector.load %arg9[%13, %c0_13, %c0_14] : memref<8x8x384xf32, #tpu.memory_space<vmem>>, vector<1x8x384xf32>
    %15 = vector.shape_cast %14 : vector<1x8x384xf32> to vector<8x384xf32>
    %16 = vector.extract_strided_slice %15 {offsets = [0, 0], sizes = [8, 256], strides = [1, 1]} : vector<8x384xf32> to vector<8x256xf32>
    %c0_15 = arith.constant 0 : index
    %c0_16 = arith.constant 0 : index
    %17 = vector.load %arg5[%c0_15, %c0_16] : memref<128x256xf32, #tpu.memory_space<vmem>>, vector<128x256xf32>
    %cst_17 = arith.constant dense<0.000000e+00> : vector<8x256xf32>
    %18 = tpu.matmul %12, %17, %cst_17 {dimension_numbers = #tpu.dot_dimension_numbers<[1], [0], [0], [1], [0, 0, 1, 1], [], []>} : vector<8x128xf32>, vector<128x256xf32>, vector<8x256xf32> -> vector<8x256xf32>
    %19 = arith.addf %16, %18 : vector<8x256xf32>
    %cst_18 = arith.constant 5.000000e-01 : f32
    %20 = vector.broadcast %cst_18 : f32 to vector<8x256xf32>
    %21 = arith.mulf %20, %19 : vector<8x256xf32>
    %22 = math.tanh %21 : vector<8x256xf32>
    %cst_19 = arith.constant 1.000000e+00 : f32
    %23 = vector.broadcast %cst_19 : f32 to vector<8x256xf32>
    %24 = arith.addf %22, %23 : vector<8x256xf32>
    %cst_20 = arith.constant 5.000000e-01 : f32
    %25 = vector.broadcast %cst_20 : f32 to vector<8x256xf32>
    %26 = arith.mulf %25, %24 : vector<8x256xf32>
    %27 = vector.extract_strided_slice %26 {offsets = [0, 0], sizes = [8, 128], strides = [1, 1]} : vector<8x256xf32> to vector<8x128xf32>
    %28 = vector.extract_strided_slice %26 {offsets = [0, 128], sizes = [8, 128], strides = [1, 1]} : vector<8x256xf32> to vector<8x128xf32>
    %29 = vector.extract_strided_slice %15 {offsets = [0, 256], sizes = [8, 128], strides = [1, 1]} : vector<8x384xf32> to vector<8x128xf32>
    %30 = arith.mulf %28, %12 : vector<8x128xf32>
    %c0_21 = arith.constant 0 : index
    %c0_22 = arith.constant 0 : index
    %31 = vector.load %arg6[%c0_21, %c0_22] : memref<128x128xf32, #tpu.memory_space<vmem>>, vector<128x128xf32>
    %cst_23 = arith.constant dense<0.000000e+00> : vector<8x128xf32>
    %32 = tpu.matmul %30, %31, %cst_23 {dimension_numbers = #tpu.dot_dimension_numbers<[1], [0], [0], [1], [0, 0, 1, 1], [], []>} : vector<8x128xf32>, vector<128x128xf32>, vector<8x128xf32> -> vector<8x128xf32>
    %33 = arith.addf %29, %32 : vector<8x128xf32>
    %34 = math.tanh %33 : vector<8x128xf32>
    %35 = arith.subf %34, %12 : vector<8x128xf32>
    %36 = arith.mulf %27, %35 : vector<8x128xf32>
    %37 = arith.addf %12, %36 : vector<8x128xf32>
    %38 = arith.index_cast %c0_i32_12 : i32 to index
    %c0_24 = arith.constant 0 : index
    %c0_25 = arith.constant 0 : index
    %39 = vector.load %arg7[%38, %c0_24, %c0_25] : memref<8x8x128xf32, #tpu.memory_space<vmem>>, vector<1x8x128xf32>
    %40 = vector.shape_cast %39 : vector<1x8x128xf32> to vector<8x128xf32>
    %41 = vector.shape_cast %37 : vector<8x128xf32> to vector<1x8x128xf32>
    tpu.vector_store %arg7[%38, %c0_24, %c0_25], %41 {strides = array<i32>} : memref<8x8x128xf32, #tpu.memory_space<vmem>>, vector<1x8x128xf32>,
    %c1_i32 = arith.constant 1 : i32
    %42 = arith.index_cast %c1_i32 : i32 to index
    %c0_26 = arith.constant 0 : index
    %c0_27 = arith.constant 0 : index
    %43 = vector.load %arg9[%42, %c0_26, %c0_27] : memref<8x8x384xf32, #tpu.memory_space<vmem>>, vector<1x8x384xf32>
    %44 = vector.shape_cast %43 : vector<1x8x384xf32> to vector<8x384xf32>
    %45 = vector.extract_strided_slice %44 {offsets = [0, 0], sizes = [8, 256], strides = [1, 1]} : vector<8x384xf32> to vector<8x256xf32>
    %c0_28 = arith.constant 0 : index
    %c0_29 = arith.constant 0 : index
    %46 = vector.load %arg5[%c0_28, %c0_29] : memref<128x256xf32, #tpu.memory_space<vmem>>, vector<128x256xf32>
    %cst_30 = arith.constant dense<0.000000e+00> : vector<8x256xf32>
    %47 = tpu.matmul %37, %46, %cst_30 {dimension_numbers = #tpu.dot_dimension_numbers<[1], [0], [0], [1], [0, 0, 1, 1], [], []>} : vector<8x128xf32>, vector<128x256xf32>, vector<8x256xf32> -> vector<8x256xf32>
    %48 = arith.addf %45, %47 : vector<8x256xf32>
    %cst_31 = arith.constant 5.000000e-01 : f32
    %49 = vector.broadcast %cst_31 : f32 to vector<8x256xf32>
    %50 = arith.mulf %49, %48 : vector<8x256xf32>
    %51 = math.tanh %50 : vector<8x256xf32>
    %cst_32 = arith.constant 1.000000e+00 : f32
    %52 = vector.broadcast %cst_32 : f32 to vector<8x256xf32>
    %53 = arith.addf %51, %52 : vector<8x256xf32>
    %cst_33 = arith.constant 5.000000e-01 : f32
    %54 = vector.broadcast %cst_33 : f32 to vector<8x256xf32>
    %55 = arith.mulf %54, %53 : vector<8x256xf32>
    %56 = vector.extract_strided_slice %55 {offsets = [0, 0], sizes = [8, 128], strides = [1, 1]} : vector<8x256xf32> to vector<8x128xf32>
    %57 = vector.extract_strided_slice %55 {offsets = [0, 128], sizes = [8, 128], strides = [1, 1]} : vector<8x256xf32> to vector<8x128xf32>
    %58 = vector.extract_strided_slice %44 {offsets = [0, 256], sizes = [8, 128], strides = [1, 1]} : vector<8x384xf32> to vector<8x128xf32>
    %59 = arith.mulf %57, %37 : vector<8x128xf32>
    %c0_34 = arith.constant 0 : index
    %c0_35 = arith.constant 0 : index
    %60 = vector.load %arg6[%c0_34, %c0_35] : memref<128x128xf32, #tpu.memory_space<vmem>>, vector<128x128xf32>
    %cst_36 = arith.constant dense<0.000000e+00> : vector<8x128xf32>
    %61 = tpu.matmul %59, %60, %cst_36 {dimension_numbers = #tpu.dot_dimension_numbers<[1], [0], [0], [1], [0, 0, 1, 1], [], []>} : vector<8x128xf32>, vector<128x128xf32>, vector<8x128xf32> -> vector<8x128xf32>
    %62 = arith.addf %58, %61 : vector<8x128xf32>
    %63 = math.tanh %62 : vector<8x128xf32>
    %64 = arith.subf %63, %37 : vector<8x128xf32>
    %65 = arith.mulf %56, %64 : vector<8x128xf32>
    %66 = arith.addf %37, %65 : vector<8x128xf32>
    %67 = arith.index_cast %c1_i32 : i32 to index
    %c0_37 = arith.constant 0 : index
    %c0_38 = arith.constant 0 : index
    %68 = vector.load %arg7[%67, %c0_37, %c0_38] : memref<8x8x128xf32, #tpu.memory_space<vmem>>, vector<1x8x128xf32>
    %69 = vector.shape_cast %68 : vector<1x8x128xf32> to vector<8x128xf32>
    %70 = vector.shape_cast %66 : vector<8x128xf32> to vector<1x8x128xf32>
    tpu.vector_store %arg7[%67, %c0_37, %c0_38], %70 {strides = array<i32>} : memref<8x8x128xf32, #tpu.memory_space<vmem>>, vector<1x8x128xf32>,
    %c2_i32 = arith.constant 2 : i32
    %71 = arith.index_cast %c2_i32 : i32 to index
    %c0_39 = arith.constant 0 : index
    %c0_40 = arith.constant 0 : index
    %72 = vector.load %arg9[%71, %c0_39, %c0_40] : memref<8x8x384xf32, #tpu.memory_space<vmem>>, vector<1x8x384xf32>
    %73 = vector.shape_cast %72 : vector<1x8x384xf32> to vector<8x384xf32>
    %74 = vector.extract_strided_slice %73 {offsets = [0, 0], sizes = [8, 256], strides = [1, 1]} : vector<8x384xf32> to vector<8x256xf32>
    %c0_41 = arith.constant 0 : index
    %c0_42 = arith.constant 0 : index
    %75 = vector.load %arg5[%c0_41, %c0_42] : memref<128x256xf32, #tpu.memory_space<vmem>>, vector<128x256xf32>
    %cst_43 = arith.constant dense<0.000000e+00> : vector<8x256xf32>
    %76 = tpu.matmul %66, %75, %cst_43 {dimension_numbers = #tpu.dot_dimension_numbers<[1], [0], [0], [1], [0, 0, 1, 1], [], []>} : vector<8x128xf32>, vector<128x256xf32>, vector<8x256xf32> -> vector<8x256xf32>
    %77 = arith.addf %74, %76 : vector<8x256xf32>
    %cst_44 = arith.constant 5.000000e-01 : f32
    %78 = vector.broadcast %cst_44 : f32 to vector<8x256xf32>
    %79 = arith.mulf %78, %77 : vector<8x256xf32>
    %80 = math.tanh %79 : vector<8x256xf32>
    %cst_45 = arith.constant 1.000000e+00 : f32
    %81 = vector.broadcast %cst_45 : f32 to vector<8x256xf32>
    %82 = arith.addf %80, %81 : vector<8x256xf32>
    %cst_46 = arith.constant 5.000000e-01 : f32
    %83 = vector.broadcast %cst_46 : f32 to vector<8x256xf32>
    %84 = arith.mulf %83, %82 : vector<8x256xf32>
    %85 = vector.extract_strided_slice %84 {offsets = [0, 0], sizes = [8, 128], strides = [1, 1]} : vector<8x256xf32> to vector<8x128xf32>
    %86 = vector.extract_strided_slice %84 {offsets = [0, 128], sizes = [8, 128], strides = [1, 1]} : vector<8x256xf32> to vector<8x128xf32>
    %87 = vector.extract_strided_slice %73 {offsets = [0, 256], sizes = [8, 128], strides = [1, 1]} : vector<8x384xf32> to vector<8x128xf32>
    %88 = arith.mulf %86, %66 : vector<8x128xf32>
    %c0_47 = arith.constant 0 : index
    %c0_48 = arith.constant 0 : index
    %89 = vector.load %arg6[%c0_47, %c0_48] : memref<128x128xf32, #tpu.memory_space<vmem>>, vector<128x128xf32>
    %cst_49 = arith.constant dense<0.000000e+00> : vector<8x128xf32>
    %90 = tpu.matmul %88, %89, %cst_49 {dimension_numbers = #tpu.dot_dimension_numbers<[1], [0], [0], [1], [0, 0, 1, 1], [], []>} : vector<8x128xf32>, vector<128x128xf32>, vector<8x128xf32> -> vector<8x128xf32>
    %91 = arith.addf %87, %90 : vector<8x128xf32>
    %92 = math.tanh %91 : vector<8x128xf32>
    %93 = arith.subf %92, %66 : vector<8x128xf32>
    %94 = arith.mulf %85, %93 : vector<8x128xf32>
    %95 = arith.addf %66, %94 : vector<8x128xf32>
    %96 = arith.index_cast %c2_i32 : i32 to index
    %c0_50 = arith.constant 0 : index
    %c0_51 = arith.constant 0 : index
    %97 = vector.load %arg7[%96, %c0_50, %c0_51] : memref<8x8x128xf32, #tpu.memory_space<vmem>>, vector<1x8x128xf32>
    %98 = vector.shape_cast %97 : vector<1x8x128xf32> to vector<8x128xf32>
    %99 = vector.shape_cast %95 : vector<8x128xf32> to vector<1x8x128xf32>
    tpu.vector_store %arg7[%96, %c0_50, %c0_51], %99 {strides = array<i32>} : memref<8x8x128xf32, #tpu.memory_space<vmem>>, vector<1x8x128xf32>,
    %c3_i32 = arith.constant 3 : i32
    %100 = arith.index_cast %c3_i32 : i32 to index
    %c0_52 = arith.constant 0 : index
    %c0_53 = arith.constant 0 : index
    %101 = vector.load %arg9[%100, %c0_52, %c0_53] : memref<8x8x384xf32, #tpu.memory_space<vmem>>, vector<1x8x384xf32>
    %102 = vector.shape_cast %101 : vector<1x8x384xf32> to vector<8x384xf32>
    %103 = vector.extract_strided_slice %102 {offsets = [0, 0], sizes = [8, 256], strides = [1, 1]} : vector<8x384xf32> to vector<8x256xf32>
    %c0_54 = arith.constant 0 : index
    %c0_55 = arith.constant 0 : index
    %104 = vector.load %arg5[%c0_54, %c0_55] : memref<128x256xf32, #tpu.memory_space<vmem>>, vector<128x256xf32>
    %cst_56 = arith.constant dense<0.000000e+00> : vector<8x256xf32>
    %105 = tpu.matmul %95, %104, %cst_56 {dimension_numbers = #tpu.dot_dimension_numbers<[1], [0], [0], [1], [0, 0, 1, 1], [], []>} : vector<8x128xf32>, vector<128x256xf32>, vector<8x256xf32> -> vector<8x256xf32>
    %106 = arith.addf %103, %105 : vector<8x256xf32>
    %cst_57 = arith.constant 5.000000e-01 : f32
    %107 = vector.broadcast %cst_57 : f32 to vector<8x256xf32>
    %108 = arith.mulf %107, %106 : vector<8x256xf32>
    %109 = math.tanh %108 : vector<8x256xf32>
    %cst_58 = arith.constant 1.000000e+00 : f32
    %110 = vector.broadcast %cst_58 : f32 to vector<8x256xf32>
    %111 = arith.addf %109, %110 : vector<8x256xf32>
    %cst_59 = arith.constant 5.000000e-01 : f32
    %112 = vector.broadcast %cst_59 : f32 to vector<8x256xf32>
    %113 = arith.mulf %112, %111 : vector<8x256xf32>
    %114 = vector.extract_strided_slice %113 {offsets = [0, 0], sizes = [8, 128], strides = [1, 1]} : vector<8x256xf32> to vector<8x128xf32>
    %115 = vector.extract_strided_slice %113 {offsets = [0, 128], sizes = [8, 128], strides = [1, 1]} : vector<8x256xf32> to vector<8x128xf32>
    %116 = vector.extract_strided_slice %102 {offsets = [0, 256], sizes = [8, 128], strides = [1, 1]} : vector<8x384xf32> to vector<8x128xf32>
    %117 = arith.mulf %115, %95 : vector<8x128xf32>
    %c0_60 = arith.constant 0 : index
    %c0_61 = arith.constant 0 : index
    %118 = vector.load %arg6[%c0_60, %c0_61] : memref<128x128xf32, #tpu.memory_space<vmem>>, vector<128x128xf32>
    %cst_62 = arith.constant dense<0.000000e+00> : vector<8x128xf32>
    %119 = tpu.matmul %117, %118, %cst_62 {dimension_numbers = #tpu.dot_dimension_numbers<[1], [0], [0], [1], [0, 0, 1, 1], [], []>} : vector<8x128xf32>, vector<128x128xf32>, vector<8x128xf32> -> vector<8x128xf32>
    %120 = arith.addf %116, %119 : vector<8x128xf32>
    %121 = math.tanh %120 : vector<8x128xf32>
    %122 = arith.subf %121, %95 : vector<8x128xf32>
    %123 = arith.mulf %114, %122 : vector<8x128xf32>
    %124 = arith.addf %95, %123 : vector<8x128xf32>
    %125 = arith.index_cast %c3_i32 : i32 to index
    %c0_63 = arith.constant 0 : index
    %c0_64 = arith.constant 0 : index
    %126 = vector.load %arg7[%125, %c0_63, %c0_64] : memref<8x8x128xf32, #tpu.memory_space<vmem>>, vector<1x8x128xf32>
    %127 = vector.shape_cast %126 : vector<1x8x128xf32> to vector<8x128xf32>
    %128 = vector.shape_cast %124 : vector<8x128xf32> to vector<1x8x128xf32>
    tpu.vector_store %arg7[%125, %c0_63, %c0_64], %128 {strides = array<i32>} : memref<8x8x128xf32, #tpu.memory_space<vmem>>, vector<1x8x128xf32>,
    %c4_i32 = arith.constant 4 : i32
    %129 = arith.index_cast %c4_i32 : i32 to index
    %c0_65 = arith.constant 0 : index
    %c0_66 = arith.constant 0 : index
    %130 = vector.load %arg9[%129, %c0_65, %c0_66] : memref<8x8x384xf32, #tpu.memory_space<vmem>>, vector<1x8x384xf32>
    %131 = vector.shape_cast %130 : vector<1x8x384xf32> to vector<8x384xf32>
    %132 = vector.extract_strided_slice %131 {offsets = [0, 0], sizes = [8, 256], strides = [1, 1]} : vector<8x384xf32> to vector<8x256xf32>
    %c0_67 = arith.constant 0 : index
    %c0_68 = arith.constant 0 : index
    %133 = vector.load %arg5[%c0_67, %c0_68] : memref<128x256xf32, #tpu.memory_space<vmem>>, vector<128x256xf32>
    %cst_69 = arith.constant dense<0.000000e+00> : vector<8x256xf32>
    %134 = tpu.matmul %124, %133, %cst_69 {dimension_numbers = #tpu.dot_dimension_numbers<[1], [0], [0], [1], [0, 0, 1, 1], [], []>} : vector<8x128xf32>, vector<128x256xf32>, vector<8x256xf32> -> vector<8x256xf32>
    %135 = arith.addf %132, %134 : vector<8x256xf32>
    %cst_70 = arith.constant 5.000000e-01 : f32
    %136 = vector.broadcast %cst_70 : f32 to vector<8x256xf32>
    %137 = arith.mulf %136, %135 : vector<8x256xf32>
    %138 = math.tanh %137 : vector<8x256xf32>
    %cst_71 = arith.constant 1.000000e+00 : f32
    %139 = vector.broadcast %cst_71 : f32 to vector<8x256xf32>
    %140 = arith.addf %138, %139 : vector<8x256xf32>
    %cst_72 = arith.constant 5.000000e-01 : f32
    %141 = vector.broadcast %cst_72 : f32 to vector<8x256xf32>
    %142 = arith.mulf %141, %140 : vector<8x256xf32>
    %143 = vector.extract_strided_slice %142 {offsets = [0, 0], sizes = [8, 128], strides = [1, 1]} : vector<8x256xf32> to vector<8x128xf32>
    %144 = vector.extract_strided_slice %142 {offsets = [0, 128], sizes = [8, 128], strides = [1, 1]} : vector<8x256xf32> to vector<8x128xf32>
    %145 = vector.extract_strided_slice %131 {offsets = [0, 256], sizes = [8, 128], strides = [1, 1]} : vector<8x384xf32> to vector<8x128xf32>
    %146 = arith.mulf %144, %124 : vector<8x128xf32>
    %c0_73 = arith.constant 0 : index
    %c0_74 = arith.constant 0 : index
    %147 = vector.load %arg6[%c0_73, %c0_74] : memref<128x128xf32, #tpu.memory_space<vmem>>, vector<128x128xf32>
    %cst_75 = arith.constant dense<0.000000e+00> : vector<8x128xf32>
    %148 = tpu.matmul %146, %147, %cst_75 {dimension_numbers = #tpu.dot_dimension_numbers<[1], [0], [0], [1], [0, 0, 1, 1], [], []>} : vector<8x128xf32>, vector<128x128xf32>, vector<8x128xf32> -> vector<8x128xf32>
    %149 = arith.addf %145, %148 : vector<8x128xf32>
    %150 = math.tanh %149 : vector<8x128xf32>
    %151 = arith.subf %150, %124 : vector<8x128xf32>
    %152 = arith.mulf %143, %151 : vector<8x128xf32>
    %153 = arith.addf %124, %152 : vector<8x128xf32>
    %154 = arith.index_cast %c4_i32 : i32 to index
    %c0_76 = arith.constant 0 : index
    %c0_77 = arith.constant 0 : index
    %155 = vector.load %arg7[%154, %c0_76, %c0_77] : memref<8x8x128xf32, #tpu.memory_space<vmem>>, vector<1x8x128xf32>
    %156 = vector.shape_cast %155 : vector<1x8x128xf32> to vector<8x128xf32>
    %157 = vector.shape_cast %153 : vector<8x128xf32> to vector<1x8x128xf32>
    tpu.vector_store %arg7[%154, %c0_76, %c0_77], %157 {strides = array<i32>} : memref<8x8x128xf32, #tpu.memory_space<vmem>>, vector<1x8x128xf32>,
    %c5_i32 = arith.constant 5 : i32
    %158 = arith.index_cast %c5_i32 : i32 to index
    %c0_78 = arith.constant 0 : index
    %c0_79 = arith.constant 0 : index
    %159 = vector.load %arg9[%158, %c0_78, %c0_79] : memref<8x8x384xf32, #tpu.memory_space<vmem>>, vector<1x8x384xf32>
    %160 = vector.shape_cast %159 : vector<1x8x384xf32> to vector<8x384xf32>
    %161 = vector.extract_strided_slice %160 {offsets = [0, 0], sizes = [8, 256], strides = [1, 1]} : vector<8x384xf32> to vector<8x256xf32>
    %c0_80 = arith.constant 0 : index
    %c0_81 = arith.constant 0 : index
    %162 = vector.load %arg5[%c0_80, %c0_81] : memref<128x256xf32, #tpu.memory_space<vmem>>, vector<128x256xf32>
    %cst_82 = arith.constant dense<0.000000e+00> : vector<8x256xf32>
    %163 = tpu.matmul %153, %162, %cst_82 {dimension_numbers = #tpu.dot_dimension_numbers<[1], [0], [0], [1], [0, 0, 1, 1], [], []>} : vector<8x128xf32>, vector<128x256xf32>, vector<8x256xf32> -> vector<8x256xf32>
    %164 = arith.addf %161, %163 : vector<8x256xf32>
    %cst_83 = arith.constant 5.000000e-01 : f32
    %165 = vector.broadcast %cst_83 : f32 to vector<8x256xf32>
    %166 = arith.mulf %165, %164 : vector<8x256xf32>
    %167 = math.tanh %166 : vector<8x256xf32>
    %cst_84 = arith.constant 1.000000e+00 : f32
    %168 = vector.broadcast %cst_84 : f32 to vector<8x256xf32>
    %169 = arith.addf %167, %168 : vector<8x256xf32>
    %cst_85 = arith.constant 5.000000e-01 : f32
    %170 = vector.broadcast %cst_85 : f32 to vector<8x256xf32>
    %171 = arith.mulf %170, %169 : vector<8x256xf32>
    %172 = vector.extract_strided_slice %171 {offsets = [0, 0], sizes = [8, 128], strides = [1, 1]} : vector<8x256xf32> to vector<8x128xf32>
    %173 = vector.extract_strided_slice %171 {offsets = [0, 128], sizes = [8, 128], strides = [1, 1]} : vector<8x256xf32> to vector<8x128xf32>
    %174 = vector.extract_strided_slice %160 {offsets = [0, 256], sizes = [8, 128], strides = [1, 1]} : vector<8x384xf32> to vector<8x128xf32>
    %175 = arith.mulf %173, %153 : vector<8x128xf32>
    %c0_86 = arith.constant 0 : index
    %c0_87 = arith.constant 0 : index
    %176 = vector.load %arg6[%c0_86, %c0_87] : memref<128x128xf32, #tpu.memory_space<vmem>>, vector<128x128xf32>
    %cst_88 = arith.constant dense<0.000000e+00> : vector<8x128xf32>
    %177 = tpu.matmul %175, %176, %cst_88 {dimension_numbers = #tpu.dot_dimension_numbers<[1], [0], [0], [1], [0, 0, 1, 1], [], []>} : vector<8x128xf32>, vector<128x128xf32>, vector<8x128xf32> -> vector<8x128xf32>
    %178 = arith.addf %174, %177 : vector<8x128xf32>
    %179 = math.tanh %178 : vector<8x128xf32>
    %180 = arith.subf %179, %153 : vector<8x128xf32>
    %181 = arith.mulf %172, %180 : vector<8x128xf32>
    %182 = arith.addf %153, %181 : vector<8x128xf32>
    %183 = arith.index_cast %c5_i32 : i32 to index
    %c0_89 = arith.constant 0 : index
    %c0_90 = arith.constant 0 : index
    %184 = vector.load %arg7[%183, %c0_89, %c0_90] : memref<8x8x128xf32, #tpu.memory_space<vmem>>, vector<1x8x128xf32>
    %185 = vector.shape_cast %184 : vector<1x8x128xf32> to vector<8x128xf32>
    %186 = vector.shape_cast %182 : vector<8x128xf32> to vector<1x8x128xf32>
    tpu.vector_store %arg7[%183, %c0_89, %c0_90], %186 {strides = array<i32>} : memref<8x8x128xf32, #tpu.memory_space<vmem>>, vector<1x8x128xf32>,
    %c6_i32 = arith.constant 6 : i32
    %187 = arith.index_cast %c6_i32 : i32 to index
    %c0_91 = arith.constant 0 : index
    %c0_92 = arith.constant 0 : index
    %188 = vector.load %arg9[%187, %c0_91, %c0_92] : memref<8x8x384xf32, #tpu.memory_space<vmem>>, vector<1x8x384xf32>
    %189 = vector.shape_cast %188 : vector<1x8x384xf32> to vector<8x384xf32>
    %190 = vector.extract_strided_slice %189 {offsets = [0, 0], sizes = [8, 256], strides = [1, 1]} : vector<8x384xf32> to vector<8x256xf32>
    %c0_93 = arith.constant 0 : index
    %c0_94 = arith.constant 0 : index
    %191 = vector.load %arg5[%c0_93, %c0_94] : memref<128x256xf32, #tpu.memory_space<vmem>>, vector<128x256xf32>
    %cst_95 = arith.constant dense<0.000000e+00> : vector<8x256xf32>
    %192 = tpu.matmul %182, %191, %cst_95 {dimension_numbers = #tpu.dot_dimension_numbers<[1], [0], [0], [1], [0, 0, 1, 1], [], []>} : vector<8x128xf32>, vector<128x256xf32>, vector<8x256xf32> -> vector<8x256xf32>
    %193 = arith.addf %190, %192 : vector<8x256xf32>
    %cst_96 = arith.constant 5.000000e-01 : f32
    %194 = vector.broadcast %cst_96 : f32 to vector<8x256xf32>
    %195 = arith.mulf %194, %193 : vector<8x256xf32>
    %196 = math.tanh %195 : vector<8x256xf32>
    %cst_97 = arith.constant 1.000000e+00 : f32
    %197 = vector.broadcast %cst_97 : f32 to vector<8x256xf32>
    %198 = arith.addf %196, %197 : vector<8x256xf32>
    %cst_98 = arith.constant 5.000000e-01 : f32
    %199 = vector.broadcast %cst_98 : f32 to vector<8x256xf32>
    %200 = arith.mulf %199, %198 : vector<8x256xf32>
    %201 = vector.extract_strided_slice %200 {offsets = [0, 0], sizes = [8, 128], strides = [1, 1]} : vector<8x256xf32> to vector<8x128xf32>
    %202 = vector.extract_strided_slice %200 {offsets = [0, 128], sizes = [8, 128], strides = [1, 1]} : vector<8x256xf32> to vector<8x128xf32>
    %203 = vector.extract_strided_slice %189 {offsets = [0, 256], sizes = [8, 128], strides = [1, 1]} : vector<8x384xf32> to vector<8x128xf32>
    %204 = arith.mulf %202, %182 : vector<8x128xf32>
    %c0_99 = arith.constant 0 : index
    %c0_100 = arith.constant 0 : index
    %205 = vector.load %arg6[%c0_99, %c0_100] : memref<128x128xf32, #tpu.memory_space<vmem>>, vector<128x128xf32>
    %cst_101 = arith.constant dense<0.000000e+00> : vector<8x128xf32>
    %206 = tpu.matmul %204, %205, %cst_101 {dimension_numbers = #tpu.dot_dimension_numbers<[1], [0], [0], [1], [0, 0, 1, 1], [], []>} : vector<8x128xf32>, vector<128x128xf32>, vector<8x128xf32> -> vector<8x128xf32>
    %207 = arith.addf %203, %206 : vector<8x128xf32>
    %208 = math.tanh %207 : vector<8x128xf32>
    %209 = arith.subf %208, %182 : vector<8x128xf32>
    %210 = arith.mulf %201, %209 : vector<8x128xf32>
    %211 = arith.addf %182, %210 : vector<8x128xf32>
    %212 = arith.index_cast %c6_i32 : i32 to index
    %c0_102 = arith.constant 0 : index
    %c0_103 = arith.constant 0 : index
    %213 = vector.load %arg7[%212, %c0_102, %c0_103] : memref<8x8x128xf32, #tpu.memory_space<vmem>>, vector<1x8x128xf32>
    %214 = vector.shape_cast %213 : vector<1x8x128xf32> to vector<8x128xf32>
    %215 = vector.shape_cast %211 : vector<8x128xf32> to vector<1x8x128xf32>
    tpu.vector_store %arg7[%212, %c0_102, %c0_103], %215 {strides = array<i32>} : memref<8x8x128xf32, #tpu.memory_space<vmem>>, vector<1x8x128xf32>,
    %c7_i32 = arith.constant 7 : i32
    %216 = arith.index_cast %c7_i32 : i32 to index
    %c0_104 = arith.constant 0 : index
    %c0_105 = arith.constant 0 : index
    %217 = vector.load %arg9[%216, %c0_104, %c0_105] : memref<8x8x384xf32, #tpu.memory_space<vmem>>, vector<1x8x384xf32>
    %218 = vector.shape_cast %217 : vector<1x8x384xf32> to vector<8x384xf32>
    %219 = vector.extract_strided_slice %218 {offsets = [0, 0], sizes = [8, 256], strides = [1, 1]} : vector<8x384xf32> to vector<8x256xf32>
    %c0_106 = arith.constant 0 : index
    %c0_107 = arith.constant 0 : index
    %220 = vector.load %arg5[%c0_106, %c0_107] : memref<128x256xf32, #tpu.memory_space<vmem>>, vector<128x256xf32>
    %cst_108 = arith.constant dense<0.000000e+00> : vector<8x256xf32>
    %221 = tpu.matmul %211, %220, %cst_108 {dimension_numbers = #tpu.dot_dimension_numbers<[1], [0], [0], [1], [0, 0, 1, 1], [], []>} : vector<8x128xf32>, vector<128x256xf32>, vector<8x256xf32> -> vector<8x256xf32>
    %222 = arith.addf %219, %221 : vector<8x256xf32>
    %cst_109 = arith.constant 5.000000e-01 : f32
    %223 = vector.broadcast %cst_109 : f32 to vector<8x256xf32>
    %224 = arith.mulf %223, %222 : vector<8x256xf32>
    %225 = math.tanh %224 : vector<8x256xf32>
    %cst_110 = arith.constant 1.000000e+00 : f32
    %226 = vector.broadcast %cst_110 : f32 to vector<8x256xf32>
    %227 = arith.addf %225, %226 : vector<8x256xf32>
    %cst_111 = arith.constant 5.000000e-01 : f32
    %228 = vector.broadcast %cst_111 : f32 to vector<8x256xf32>
    %229 = arith.mulf %228, %227 : vector<8x256xf32>
    %230 = vector.extract_strided_slice %229 {offsets = [0, 0], sizes = [8, 128], strides = [1, 1]} : vector<8x256xf32> to vector<8x128xf32>
    %231 = vector.extract_strided_slice %229 {offsets = [0, 128], sizes = [8, 128], strides = [1, 1]} : vector<8x256xf32> to vector<8x128xf32>
    %232 = vector.extract_strided_slice %218 {offsets = [0, 256], sizes = [8, 128], strides = [1, 1]} : vector<8x384xf32> to vector<8x128xf32>
    %233 = arith.mulf %231, %211 : vector<8x128xf32>
    %c0_112 = arith.constant 0 : index
    %c0_113 = arith.constant 0 : index
    %234 = vector.load %arg6[%c0_112, %c0_113] : memref<128x128xf32, #tpu.memory_space<vmem>>, vector<128x128xf32>
    %cst_114 = arith.constant dense<0.000000e+00> : vector<8x128xf32>
    %235 = tpu.matmul %233, %234, %cst_114 {dimension_numbers = #tpu.dot_dimension_numbers<[1], [0], [0], [1], [0, 0, 1, 1], [], []>} : vector<8x128xf32>, vector<128x128xf32>, vector<8x128xf32> -> vector<8x128xf32>
    %236 = arith.addf %232, %235 : vector<8x128xf32>
    %237 = math.tanh %236 : vector<8x128xf32>
    %238 = arith.subf %237, %211 : vector<8x128xf32>
    %239 = arith.mulf %230, %238 : vector<8x128xf32>
    %240 = arith.addf %211, %239 : vector<8x128xf32>
    %241 = arith.index_cast %c7_i32 : i32 to index
    %c0_115 = arith.constant 0 : index
    %c0_116 = arith.constant 0 : index
    %242 = vector.load %arg7[%241, %c0_115, %c0_116] : memref<8x8x128xf32, #tpu.memory_space<vmem>>, vector<1x8x128xf32>
    %243 = vector.shape_cast %242 : vector<1x8x128xf32> to vector<8x128xf32>
    %244 = vector.shape_cast %240 : vector<8x128xf32> to vector<1x8x128xf32>
    tpu.vector_store %arg7[%241, %c0_115, %c0_116], %244 {strides = array<i32>} : memref<8x8x128xf32, #tpu.memory_space<vmem>>, vector<1x8x128xf32>,
    %c8_i32 = arith.constant 8 : i32
    %c0_117 = arith.constant 0 : index
    %c0_118 = arith.constant 0 : index
    %245 = vector.load %arg8[%c0_117, %c0_118] : memref<8x128xf32, #tpu.memory_space<vmem>>, vector<8x128xf32>
    tpu.vector_store %arg8[%c0_117, %c0_118], %240 {strides = array<i32>} : memref<8x128xf32, #tpu.memory_space<vmem>>, vector<8x128xf32>,
    return
  }
  func.func @transform_0(%arg0: i32) -> (i32, i32, i32) {
    %c0_i32 = arith.constant 0 : i32
    %c0_i32_0 = arith.constant 0 : i32
    %c0_i32_1 = arith.constant 0 : i32
    return %arg0, %c0_i32, %c0_i32_0 : i32, i32, i32
  }
  func.func @transform_1(%arg0: i32) -> (i32, i32) {
    %c0_i32 = arith.constant 0 : i32
    %c0_i32_0 = arith.constant 0 : i32
    %c0_i32_1 = arith.constant 0 : i32
    return %c0_i32, %c0_i32_0 : i32, i32
  }
  func.func @transform_2(%arg0: i32) -> (i32, i32) {
    %c0_i32 = arith.constant 0 : i32
    %c0_i32_0 = arith.constant 0 : i32
    %c0_i32_1 = arith.constant 0 : i32
    return %c0_i32, %c0_i32_0 : i32, i32
  }
  func.func @transform_3(%arg0: i32) -> (i32, i32) {
    %c0_i32 = arith.constant 0 : i32
    %c0_i32_0 = arith.constant 0 : i32
    %c0_i32_1 = arith.constant 0 : i32
    return %c0_i32, %c0_i32_0 : i32, i32
  }
  func.func @transform_4(%arg0: i32) -> (i32, i32) {
    %c0_i32 = arith.constant 0 : i32
    %c0_i32_0 = arith.constant 0 : i32
    %c0_i32_1 = arith.constant 0 : i32
    return %c0_i32, %c0_i32_0 : i32, i32
  }
  func.func @transform_5(%arg0: i32) -> (i32, i32) {
    %c0_i32 = arith.constant 0 : i32
    %c0_i32_0 = arith.constant 0 : i32
    %c0_i32_1 = arith.constant 0 : i32
    return %c0_i32, %c0_i32_0 : i32, i32
  }
  func.func @transform_6(%arg0: i32) -> (i32, i32, i32) {
    %c0_i32 = arith.constant 0 : i32
    %c0_i32_0 = arith.constant 0 : i32
    %c0_i32_1 = arith.constant 0 : i32
    return %arg0, %c0_i32, %c0_i32_0 : i32, i32, i32
  }
}

</mosaic_0001>

<bundles_post_ra>
// kernel: tpu_custom_call.1
= control target key start
LH: loop header
LB: loop body
LE: loop exit
PB: predicated region body
PF: predicated region fallthrough
CT: control target
= control target key end

     0   :  { %11 = vsyncpa [#allocation5], 0  ;;  %s3742_s0 = inlined_call_operand.hbm [shape: f32[8,8,16], index: 0, kind: input, shape index: {}]   ;;  %s3743_s1 = inlined_call_operand.hbm [shape: f32[8,128], index: 1, kind: input, shape index: {}]   ;;  %s3744_s2 = inlined_call_operand.hbm [shape: f32[16,384], index: 2, kind: input, shape index: {}]   ;;  %s3745_s3 = inlined_call_operand.vmem [shape: f32[1,384], index: 3, kind: input, shape index: {}]   ;;  %s3746_s4 = inlined_call_operand.hbm [shape: f32[128,256], index: 4, kind: input, shape index: {}]   ;;  %s3747_s5 = inlined_call_operand.hbm [shape: f32[128,128], index: 5, kind: input, shape index: {}]   ;;  %s3748_s6 = inlined_call_operand.hbm [shape: f32[8,8,128], index: 6, kind: output, shape index: {}]  }
   0x1   :  { %12 = vsyncpa [#allocation8], 0 }
   0x2   :  { %13 = vsyncpa [#allocation11], 0 }
   0x3   :  { %14 = vsyncpa [#allocation6], 0  ;;  %s2749_s21 = smov [#allocation7]   ;;  %s2750_s23 = smov [#allocation10]  }
   0x4   :  { %s33_s22 = sshll.u32 %s2749_s21, 4  ;;  %s56_s24 = sshll.u32 %s2750_s23, 4  ;;  %s34_s22 = int_to_ptr.vmem [resolvable:$true] %s33_s22  ;;  %s57_s24 = int_to_ptr.vmem [resolvable:$true] %s56_s24 }
   0x5   :  { %s2629_s25 = scalar_lea.vmem %s34_s22, 128  ;;  %p2634_p1 = scmp.lt.s32.totalorder %s34_s22, %s34_s22 }
   0x6   :  { %p2630_p0 = scmp.ne.s32.totalorder %s34_s22, %s2629_s25  ;;  %p2635_p2 = scmp.lt.s32.totalorder %s2629_s25, %s2629_s25 }
   0x8   :  { %p2636_p3 = por %p2635_p2, %p2634_p1 }
   0xa   :  { %p2637_p4 = pnand %p2636_p3, %p2630_p0 }
   0xc   :  { %2640 = shalt.err (!%p2637_p4)
}
   0xd   :  { %36 = dma.hbm_to_vmem [thread:$0]  %s3743_s1, 128, %s34_s22, [#allocation8]  }
   0xe   :  { %s2649_s28 = scalar_lea.vmem %s57_s24, 4096  ;;  %p2654_p6 = scmp.lt.s32.totalorder %s57_s24, %s57_s24 }
   0xf   :  { %p2650_p5 = scmp.ne.s32.totalorder %s57_s24, %s2649_s28  ;;  %p2655_p7 = scmp.lt.s32.totalorder %s2649_s28, %s2649_s28 }
  0x11   :  { %p2656_p8 = por %p2655_p7, %p2654_p6 }
  0x13   :  { %p2657_p9 = pnand %p2656_p8, %p2650_p5 }
  0x15   :  { %2660 = shalt.err (!%p2657_p9)
}
  0x16   :  { %s2751_s29 = smov 256   ;;  %s2752_s30 = smov 16  }
  0x17   :  { %62 = dma.hbm_to_vmem [thread:$0]  %s3746_s4, 4096, %s57_s24, [#allocation11], %s2751_s29, %s2751_s29, %s2752_s30  }
  0x18   :  { %s2753_s9 = smov [#allocation4]  }
  0x19   :  { %s20_s10 = sshll.u32 %s2753_s9, 4  ;;  %s21_s10 = int_to_ptr.vmem [resolvable:$true] %s20_s10 }
  0x1a   :  { %s2669_s11 = scalar_lea.vmem %s21_s10, 1024  ;;  %p2674_p11 = scmp.lt.s32.totalorder %s21_s10, %s21_s10 }
  0x1b   :  { %p2670_p10 = scmp.ne.s32.totalorder %s21_s10, %s2669_s11  ;;  %p2675_p12 = scmp.lt.s32.totalorder %s2669_s11, %s2669_s11 }
  0x1d   :  { %p2676_p13 = por %p2675_p12, %p2674_p11 }
  0x1f   :  { %p2677_p0 = pnand %p2676_p13, %p2670_p10 }
  0x21   :  { %2680 = shalt.err (!%p2677_p0)
}
  0x22   :  { %s2754_s1 = smov 128   ;;  %s2755_s12 = smov 8  }
  0x23   :  { %26 = dma.hbm_to_vmem [thread:$0]  %s3742_s0, 1024, %s21_s10, [#allocation5], %s2754_s1, %s2754_s1, %s2755_s12  }
  0x24   :  { %s2756_s4 = smov [#allocation9]  }
  0x25   :  { %s42_s15 = sshll.u32 %s2756_s4, 4  ;;  %s43_s15 = int_to_ptr.vmem [resolvable:$true] %s42_s15 }
  0x26   :  { %s2689_s16 = scalar_lea.vmem %s43_s15, 768  ;;  %p2694_p2 = scmp.lt.s32.totalorder %s43_s15, %s43_s15 }
  0x27   :  { %p2690_p1 = scmp.ne.s32.totalorder %s43_s15, %s2689_s16  ;;  %p2695_p3 = scmp.lt.s32.totalorder %s2689_s16, %s2689_s16 }
  0x29   :  { %p2696_p4 = por %p2695_p3, %p2694_p2 }
  0x2b   :  { %p2697_p5 = pnand %p2696_p4, %p2690_p1 }
  0x2d   :  { %2700 = shalt.err (!%p2697_p5)
}
  0x2e   :  { %s2757_s17 = smov 384   ;;  %s2758_s18 = smov 24  }
  0x2f   :  { %48 = dma.hbm_to_vmem [thread:$0]  %s3744_s2, 768, %s43_s15, [#allocation8], %s2757_s17, %s2757_s17, %s2758_s18  }
  0x30   :  { %s2759_s21 = smov [#allocation12]  }
  0x31   :  { %s68_s22 = sshll.u32 %s2759_s21, 4  ;;  %s69_s22 = int_to_ptr.vmem [resolvable:$true] %s68_s22 }
  0x32   :  { %s2709_s0 = scalar_lea.vmem %s69_s22, 2048  ;;  %p2714_p7 = scmp.lt.s32.totalorder %s69_s22, %s69_s22 }
  0x33   :  { %p2710_p6 = scmp.ne.s32.totalorder %s69_s22, %s2709_s0  ;;  %p2715_p8 = scmp.lt.s32.totalorder %s2709_s0, %s2709_s0 }
  0x35   :  { %p2716_p9 = por %p2715_p8, %p2714_p7 }
  0x37   :  { %p2717_p10 = pnand %p2716_p9, %p2710_p6 }
  0x39   :  { %2720 = shalt.err (!%p2717_p10)
}
  0x3a   :  { %74 = dma.hbm_to_vmem [thread:$0]  %s3747_s5, 2048, %s69_s22, [#allocation11], %s2754_s1, %s2754_s1, %s2755_s12  }
  0x3b   :  { %2741 = dma.done.wait [#allocation5], 1024  }
  0x3c   :  { %2742 = vsyncadd [#allocation5], 4294966272 }
  0x3d   :  { %2743 = dma.done.wait [#allocation8], 896  }
  0x3e   :  { %2744 = vsyncadd [#allocation8], 4294966400 }
  0x3f   :  { %2745 = dma.done.wait [#allocation11], 6144  }
  0x40   :  { %2746 = vsyncadd [#allocation11], 4294961152  ;;  %v3749_v0 = vmov 0.0   ;;  %v108_v1 = vld [vmem:[#allocation9 + $0x20] sm:$0xff]  ;;  %v107_v2 = vld [vmem:[#allocation9 + $0x18] sm:$0xff]  ;;  %vm127_vm0 = vcmask 130048  }
  0x41   :  { %216 = vmatprep.mubr.f32.mxu0 %v3749_v0  ;;  %v105_v3 = vld [vmem:[#allocation9 + $0x8] sm:$0xff]  ;;  %180 = vmatprep.subr.mxu0 %v108_v1  ;;  %v104_v4 = vld [vmem:[#allocation9] sm:$0xff]  ;;  %v96_v5 = vld [vmem:[#allocation4] sm:$0xff]  ;;  %vm2761_vm1 = vmmov 0   ;;  %v112_v1 = vlaneseq }
  0x42   :  { %181 = vmatpush1.msra.mxu0 %v107_v2  ;;  %v2820_v6 = vld [vmem:[#allocation10 + $0xf8] sm:$0xff]  ;;  %2267 = vmatprep.mubr.msk.f32.mxu1 %vm127_vm0, %v96_v5  ;;  %v2823_v7 = vld [vmem:[#allocation10 + $0xf0] sm:$0xff]  ;;  %v2825_v8 = vld [vmem:[#allocation10 + $0xe8] sm:$0xff] }
  0x43   :  { %3765 = vst [vmem:[#allocation18_spill] sm:$0xff] %v2820_v6  ;;  %182 = vmatprep.subr.mxu0 %v105_v3  ;;  %v2829_v9 = vld [vmem:[#allocation10 + $0xe0] sm:$0xff]  ;;  %v2833_v10 = vld [vmem:[#allocation4 + $0x8] sm:$0xff]  ;;  %v2835_v11 = vld [vmem:[#allocation10 + $0xd8] sm:$0xff]  ;;  %v3072_v2 = vshrl.u32 %v112_v1, 7 }
  0x44   :  { %183 = vmatpush1.msra.mxu0 %v104_v4  ;;  %v2838_v12 = vld [vmem:[#allocation10 + $0xd0] sm:$0xff]  ;;  %v2841_v13 = vld [vmem:[#allocation10 + $0xc8] sm:$0xff]  ;;  %v2846_v14 = vld [vmem:[#allocation10 + $0xc0] sm:$0xff] }
  0x45   :  { %2101 = vmatmul.mubr.msk.f32.vlgmr.msra.gmra.mxu0 %vm127_vm0, %v96_v5  ;;  %430 = vmatprep.subr.mxu0 %v2820_v6  ;;  %v2850_v15 = vld [vmem:[#allocation4 + $0x10] sm:$0xff]  ;;  %v2855_v17 = vld [vmem:[#allocation10 + $0xb0] sm:$0xff]  ;;  %v2858_v18 = vld [vmem:[#allocation10 + $0xa8] sm:$0xff]  ;;  %v114_v3 = vsub.s32 0, %v3072_v2 }
  0x46   :  { %431 = vmatpush1.msra.mxu0 %v2823_v7  ;;  %222 = vmatprep.mubr.f32.mxu0 %v3749_v0  ;;  %v2852_v16 = vld [vmem:[#allocation10 + $0xb8] sm:$0xff]  ;;  %v2863_v19 = vld [vmem:[#allocation10 + $0xa0] sm:$0xff]  ;;  %v2872_v22 = vld [vmem:[#allocation10 + $0x90] sm:$0xff] }
  0x47   :  { %432 = vmatprep.subr.mxu0 %v2825_v8  ;;  %v2867_v20 = vld [vmem:[#allocation4 + $0x18] sm:$0xff]  ;;  %v2869_v21 = vld [vmem:[#allocation10 + $0x98] sm:$0xff]  ;;  %v2875_v23 = vld [vmem:[#allocation10 + $0x88] sm:$0xff] }
  0x48   :  { %433 = vmatpush1.msra.mxu0 %v2829_v9  ;;  %v2880_v24 = vld [vmem:[#allocation10 + $0x80] sm:$0xff]  ;;  %v2884_v25 = vld [vmem:[#allocation4 + $0x20] sm:$0xff]  ;;  %v2886_v26 = vld [vmem:[#allocation10 + $0x78] sm:$0xff] }
  0x49   :  { %2102 = vmatmul.mubr.msk.f32.gmra.mxu0 %vm127_vm0, %v2833_v10  ;;  %434 = vmatprep.subr.mxu0 %v2835_v11  ;;  %v2889_v27 = vld [vmem:[#allocation10 + $0x70] sm:$0xff]  ;;  %v2892_v28 = vld [vmem:[#allocation10 + $0x68] sm:$0xff]  ;;  %v2897_v29 = vld [vmem:[#allocation10 + $0x60] sm:$0xff] }
  0x4a   :  { %435 = vmatpush1.msra.mxu0 %v2838_v12  ;;  %228 = vmatprep.mubr.f32.mxu0 %v3749_v0  ;;  %v2901_v30 = vld [vmem:[#allocation4 + $0x28] sm:$0xff]  ;;  %v2903_v31 = vld [vmem:[#allocation10 + $0x58] sm:$0xff]  ;;  %v2909_v33 = vld [vmem:[#allocation10 + $0x48] sm:$0xff] }
  0x4b   :  { %436 = vmatprep.subr.mxu0 %v2841_v13  ;;  %v2906_v32 = vld [vmem:[#allocation10 + $0x50] sm:$0xff]  ;;  %v2914_v34 = vld [vmem:[#allocation10 + $0x40] sm:$0xff]  ;;  %v2918_v35 = vld [vmem:[#allocation4 + $0x30] sm:$0xff] }
  0x4c   :  { %437 = vmatpush1.msra.mxu0 %v2846_v14  ;;  %v2920_v36 = vld [vmem:[#allocation10 + $0x38] sm:$0xff]  ;;  %v2923_v37 = vld [vmem:[#allocation10 + $0x30] sm:$0xff]  ;;  %v2926_v38 = vld [vmem:[#allocation10 + $0x28] sm:$0xff] }
  0x4d   :  { %2103 = vmatmul.mubr.msk.f32.gmra.mxu0 %vm127_vm0, %v2850_v15  ;;  %438 = vmatprep.subr.mxu0 %v2852_v16  ;;  %3766 = vst [vmem:[#allocation19_spill] sm:$0xff] %v2926_v38  ;;  %v2931_v39 = vld [vmem:[#allocation10 + $0x20] sm:$0xff]  ;;  %v2937_v41 = vld [vmem:[#allocation10 + $0x18] sm:$0xff]  ;;  %v2940_v42 = vld [vmem:[#allocation10 + $0x10] sm:$0xff] }
  0x4e   :  { %439 = vmatpush1.msra.mxu0 %v2855_v17  ;;  %234 = vmatprep.mubr.f32.mxu0 %v3749_v0  ;;  %3767 = vst [vmem:[#allocation20_spill] sm:$0xff] %v2931_v39  ;;  %v2935_v40 = vld [vmem:[#allocation4 + $0x38] sm:$0xff]  ;;  %3768 = vst [vmem:[#allocation21_spill] sm:$0xff] %v2937_v41  ;;  %v2943_v43 = vld [vmem:[#allocation10 + $0x8] sm:$0xff] }
  0x4f   :  { %440 = vmatprep.subr.mxu0 %v2858_v18  ;;  %3769 = vst [vmem:[#allocation22_spill] sm:$0xff] %v2940_v42  ;;  %3770 = vst [vmem:[#allocation23_spill] sm:$0xff] %v2943_v43  ;;  %v2948_v44 = vld [vmem:[#allocation10] sm:$0xff]  ;;  %v2952_v45 = vld [vmem:[#allocation7] sm:$0xff] }
  0x50   :  { %441 = vmatpush1.msra.mxu0 %v2863_v19  ;;  %3771 = vst [vmem:[#allocation24_spill] sm:$0xff] %v2948_v44  ;;  %v109_v46 = vld [vmem:[#allocation9 + $0x28] sm:$0xff]  ;;  %v106_v47 = vld [vmem:[#allocation9 + $0x10] sm:$0xff]  ;;  %v3000_v49 = vld [vmem:[#allocation12 + $0x70] sm:$0xff] }
  0x51   :  { %2104 = vmatmul.mubr.msk.f32.gmra.mxu0 %vm127_vm0, %v2867_v20  ;;  %442 = vmatprep.subr.mxu0 %v2869_v21  ;;  %v2994_v48 = vld [vmem:[#allocation12 + $0x78] sm:$0xff]  ;;  %v3004_v50 = vld [vmem:[#allocation12 + $0x68] sm:$0xff]  ;;  %v3012_v51 = vld [vmem:[#allocation12 + $0x60] sm:$0xff] }
  0x52   :  { %443 = vmatpush1.msra.mxu0 %v2872_v22  ;;  %240 = vmatprep.mubr.f32.mxu0 %v3749_v0  ;;  %v3016_v52 = vld [vmem:[#allocation12 + $0x58] sm:$0xff]  ;;  %v3024_v53 = vld [vmem:[#allocation12 + $0x50] sm:$0xff]  ;;  %v3028_v54 = vld [vmem:[#allocation12 + $0x48] sm:$0xff] }
  0x53   :  { %444 = vmatprep.subr.mxu0 %v2875_v23  ;;  %2263 = vmatprep.subr.mxu1 %v109_v46  ;;  %v3034_v55 = vld [vmem:[#allocation12 + $0x40] sm:$0xff]  ;;  %v3038_v56 = vld [vmem:[#allocation12 + $0x38] sm:$0xff]  ;;  %v3042_v57 = vld [vmem:[#allocation12 + $0x30] sm:$0xff] }
  0x54   :  { %445 = vmatpush1.msra.mxu0 %v2880_v24  ;;  %2264 = vmatpush3.msra.mxu1 %v109_v46  ;;  %v3046_v58 = vld [vmem:[#allocation12 + $0x28] sm:$0xff]  ;;  %v3050_v59 = vld [vmem:[#allocation12 + $0x20] sm:$0xff]  ;;  %v3054_v60 = vld [vmem:[#allocation12 + $0x18] sm:$0xff] }
  0x55   :  { %2105 = vmatmul.mubr.msk.f32.gmra.mxu0 %vm127_vm0, %v2884_v25  ;;  %446 = vmatprep.subr.mxu0 %v2886_v26  ;;  %v3058_v61 = vld [vmem:[#allocation12 + $0x10] sm:$0xff]  ;;  %v3062_v62 = vld [vmem:[#allocation12 + $0x8] sm:$0xff]  ;;  %v3066_v63 = vld [vmem:[#allocation12] sm:$0xff] }
  0x56   :  { %447 = vmatpush1.msra.mxu0 %v2889_v27  ;;  %246 = vmatprep.mubr.f32.mxu0 %v3749_v0  ;;  %v3078_v4 = vld [vmem:[%s3745_s3] sm:$0x7]  ;;  %s2762_s3 = smov [#allocation13]  }
  0x57   :  { %448 = vmatprep.subr.mxu0 %v2892_v28  ;;  %2265 = vmatprep.subr.mxu1 %v106_v47  ;;  %s2087_s25 = sshll.u32 %s2762_s3, 4  ;;  %s2088_s25 = int_to_ptr.vmem [resolvable:$true] %s2087_s25 }
  0x58   :  { %449 = vmatpush1.msra.mxu0 %v2897_v29  ;;  %2266 = vmatpush3.msra.mxu1 %v106_v47  ;;  %s2721_s26 = scalar_lea.vmem %s2088_s25, 1024  ;;  %p2726_p12 = scmp.lt.s32.totalorder %s2088_s25, %s2088_s25 }
  0x59   :  { %2106 = vmatmul.mubr.msk.f32.gmra.mxu0 %vm127_vm0, %v2901_v30  ;;  %450 = vmatprep.subr.mxu0 %v2903_v31  ;;  %p2722_p11 = scmp.ne.s32.totalorder %s2088_s25, %s2721_s26  ;;  %p2727_p13 = scmp.lt.s32.totalorder %s2721_s26, %s2721_s26 }
  0x5a   :  { %451 = vmatpush1.msra.mxu0 %v2906_v32  ;;  %252 = vmatprep.mubr.f32.mxu0 %v3749_v0 }
  0x5b   :  { %452 = vmatprep.subr.mxu0 %v2909_v33  ;;  %2268 = vmatmul.mubr.msk.f32.vlgmr.msra.gmra.mxu1 %vm127_vm0, %v2833_v10  ;;  %v118_v10 = vsub.s32 1, %v3072_v2  ;;  %p2728_p0 = por %p2727_p13, %p2726_p12 }
  0x5c   :  { %453 = vmatpush1.msra.mxu0 %v2914_v34  ;;  %2279 = vmatprep.subr.mxu1 %v3749_v0 }
  0x5d   :  { %2107 = vmatmul.mubr.msk.f32.gmra.mxu0 %vm127_vm0, %v2918_v35  ;;  %454 = vmatprep.subr.mxu0 %v2920_v36  ;;  %p2729_p1 = pnand %p2728_p0, %p2722_p11 }
  0x5e   :  { %455 = vmatpush1.msra.mxu0 %v2923_v37  ;;  %258 = vmatprep.mubr.f32.mxu0 %v3749_v0 }
  0x5f   :  { %456 = vmatprep.subr.mxu0 %v2926_v38  ;;  %2270 = vmatprep.mubr.msk.f32.mxu1 %vm127_vm0, %v2850_v15 }
  0x60   :  { %457 = vmatpush1.msra.mxu0 %v2931_v39  ;;  %2280 = vmatpush3.msra.mxu1 %v2994_v48 }
  0x61   :  { %2108 = vmatmul.mubr.msk.f32.gmra.mxu0 %vm127_vm0, %v2935_v40  ;;  %458 = vmatprep.subr.mxu0 %v2937_v41 }
  0x62   :  { %459 = vmatpush1.msra.mxu0 %v2940_v42  ;;  %494 = vmatprep.mubr.f32.mxu0 %v3749_v0 }
  0x63   :  { %460 = vmatprep.subr.mxu0 %v2943_v43  ;;  %2281 = vmatprep.subr.mxu1 %v3749_v0 }
  0x64   :  { %461 = vmatpush1.msra.mxu0 %v2948_v44  ;;  %2282 = vmatpush3.msra.mxu1 %v3000_v49 }
  0x65   :  { %495 = vmatmul.mubr.f32.vlgmr.msra.gmra.mxu0 %v2952_v45  ;;  %640 = vmatprep.subr.mxu0 %v2820_v6 }
  0x66   :  { %641 = vmatpush1.msra.mxu0 %v2823_v7  ;;  %704 = vmatprep.mubr.f32.mxu0 %v3749_v0 }
  0x67   :  { %642 = vmatprep.subr.mxu0 %v2825_v8  ;;  %2283 = vmatprep.subr.mxu1 %v3749_v0 }
  0x68   :  { %643 = vmatpush1.msra.mxu0 %v2829_v9  ;;  %2271 = vmatmul.mubr.msk.f32.gmra.mxu1 %vm127_vm0, %v2867_v20  ;;  %v115_v20 = vrot.slane %v3078_v4, %v114_v3 }
  0x69   :  { %644 = vmatprep.subr.mxu0 %v2835_v11  ;;  %2284 = vmatpush3.msra.mxu1 %v3004_v50 }
  0x6a   :  { %645 = vmatpush1.msra.mxu0 %v2838_v12  ;;  %2273 = vmatprep.mubr.msk.f32.mxu1 %vm127_vm0, %v2884_v25 }
  0x6b   :  { %646 = vmatprep.subr.mxu0 %v2841_v13  ;;  %2285 = vmatprep.subr.mxu1 %v3749_v0 }
  0x6c   :  { %647 = vmatpush1.msra.mxu0 %v2846_v14  ;;  %2286 = vmatpush3.msra.mxu1 %v3012_v51 }
  0x6d   :  { %648 = vmatprep.subr.mxu0 %v2852_v16  ;;  %2287 = vmatprep.subr.mxu1 %v3749_v0 }
  0x6e   :  { %649 = vmatpush1.msra.mxu0 %v2855_v17  ;;  %2274 = vmatmul.mubr.msk.f32.gmra.mxu1 %vm127_vm0, %v2901_v30  ;;  %v119_v30 = vrot.slane %v3078_v4, %v118_v10 }
  0x6f   :  { %650 = vmatprep.subr.mxu0 %v2858_v18  ;;  %2288 = vmatpush3.msra.mxu1 %v3016_v52 }
  0x70   :  { %651 = vmatpush1.msra.mxu0 %v2863_v19  ;;  %2276 = vmatprep.mubr.msk.f32.mxu1 %vm127_vm0, %v2918_v35 }
  0x71   :  { %652 = vmatprep.subr.mxu0 %v2869_v21  ;;  %2289 = vmatprep.subr.mxu1 %v3749_v0 }
  0x72   :  { %653 = vmatpush1.msra.mxu0 %v2872_v22  ;;  %2290 = vmatpush3.msra.mxu1 %v3024_v53 }
  0x73   :  { %654 = vmatprep.subr.mxu0 %v2875_v23  ;;  %2291 = vmatprep.subr.mxu1 %v3749_v0 }
  0x74   :  { %655 = vmatpush1.msra.mxu0 %v2880_v24  ;;  %2277 = vmatmul.mubr.msk.f32.gmra.mxu1 %vm127_vm0, %v2935_v40 }
  0x75   :  { %656 = vmatprep.subr.mxu0 %v2886_v26  ;;  %2292 = vmatpush3.msra.mxu1 %v3028_v54 }
  0x76   :  { %657 = vmatpush1.msra.mxu0 %v2889_v27  ;;  %2293 = vmatprep.subr.mxu1 %v3749_v0 }
  0x77   :  { %658 = vmatprep.subr.mxu0 %v2892_v28  ;;  %2294 = vmatpush3.msra.mxu1 %v3034_v55 }
  0x78   :  { %659 = vmatpush1.msra.mxu0 %v2897_v29  ;;  %2295 = vmatprep.subr.mxu1 %v3749_v0 }
  0x79   :  { %660 = vmatprep.subr.mxu0 %v2903_v31  ;;  %2296 = vmatpush3.msra.mxu1 %v3038_v56 }
  0x7a   :  { %661 = vmatpush1.msra.mxu0 %v2906_v32  ;;  %2297 = vmatprep.subr.mxu1 %v3749_v0 }
  0x7b   :  { %662 = vmatprep.subr.mxu0 %v2909_v33  ;;  %2298 = vmatpush3.msra.mxu1 %v3042_v57 }
  0x7c   :  { %663 = vmatpush1.msra.mxu0 %v2914_v34  ;;  %2299 = vmatprep.subr.mxu1 %v3749_v0 }
  0x7d   :  { %664 = vmatprep.subr.mxu0 %v2920_v36  ;;  %2300 = vmatpush3.msra.mxu1 %v3046_v58 }
  0x7e   :  { %665 = vmatpush1.msra.mxu0 %v2923_v37  ;;  %2301 = vmatprep.subr.mxu1 %v3749_v0 }
  0x7f   :  { %666 = vmatprep.subr.mxu0 %v2926_v38  ;;  %2302 = vmatpush3.msra.mxu1 %v3050_v59 }
  0x80   :  { %667 = vmatpush1.msra.mxu0 %v2931_v39  ;;  %2303 = vmatprep.subr.mxu1 %v3749_v0 }
  0x81   :  { %668 = vmatprep.subr.mxu0 %v2937_v41  ;;  %2304 = vmatpush3.msra.mxu1 %v3054_v60 }
  0x82   :  { %669 = vmatpush1.msra.mxu0 %v2940_v42  ;;  %2305 = vmatprep.subr.mxu1 %v3749_v0 }
  0x83   :  { %670 = vmatprep.subr.mxu0 %v2943_v43  ;;  %2306 = vmatpush3.msra.mxu1 %v3058_v61 }
  0x84   :  { %671 = vmatpush1.msra.mxu0 %v2948_v44  ;;  %2307 = vmatprep.subr.mxu1 %v3749_v0 }
  0x85   :  { %851 = vmatprep.subr.mxu0 %v2820_v6  ;;  %2308 = vmatpush3.msra.mxu1 %v3062_v62 }
  0x86   :  { %2309 = vmatprep.subr.mxu1 %v3749_v0  ;;  %2311 = vmatprep.mubr.msk.f32.mxu1 %vm2761_vm1, %v3749_v0 }
  0x87   :  { %2310 = vmatpush3.msra.mxu1 %v3066_v63 }
  0x88   :  { %2314 = vmatprep.subr.mxu1 %v3749_v0 }
 0x105   :  { %v218_v5 = vpop.f32.mrf.mxu0 }
 0x107   :  { %v220_v15 = vpop.f32.mrf.mxu0 }
 0x109   :  { %v224_v25 = vpop.f32.mrf.mxu0 }
 0x10a   :  { %v3083_v35 = vadd.f32 %v224_v25, %v115_v20 }
 0x10b   :  { %v226_v40 = vpop.f32.mrf.mxu0 }
 0x10c   :  { %3772 = vst [vmem:[#allocation25_spill] sm:$0xff] %v3083_v35  ;;  %v3085_v46 = vadd.f32 %v226_v40, %v119_v30 }
 0x10d   :  { %v230_v47 = vpop.f32.mrf.mxu0 }
 0x10e   :  { %3773 = vst [vmem:[#allocation26_spill] sm:$0xff] %v3085_v46  ;;  %v3087_v1 = vadd.f32 %v230_v47, %v115_v20 }
 0x10f   :  { %v232_v0 = vpop.f32.mrf.mxu0 }
 0x110   :  { %3774 = vst [vmem:[#allocation27_spill] sm:$0xff] %v3087_v1  ;;  %v3089_v6 = vadd.f32 %v232_v0, %v119_v30 }
 0x111   :  { %v236_v44 = vpop.f32.mrf.mxu0 }
 0x112   :  { %3775 = vst [vmem:[#allocation28_spill] sm:$0xff] %v3089_v6  ;;  %v3091_v43 = vadd.f32 %v236_v44, %v115_v20 }
 0x113   :  { %v238_v42 = vpop.f32.mrf.mxu0 }
 0x114   :  { %3776 = vst [vmem:[#allocation29_spill] sm:$0xff] %v3091_v43  ;;  %v3093_v41 = vadd.f32 %v238_v42, %v119_v30 }
 0x115   :  { %v242_v3 = vpop.f32.mrf.mxu0 }
 0x116   :  { %3777 = vst [vmem:[#allocation30_spill] sm:$0xff] %v3093_v41  ;;  %v3095_v39 = vadd.f32 %v242_v3, %v115_v20 }
 0x117   :  { %v244_v10 = vpop.f32.mrf.mxu0 }
 0x118   :  { %3778 = vst [vmem:[#allocation31_spill] sm:$0xff] %v3095_v39  ;;  %v3097_v25 = vadd.f32 %v244_v10, %v119_v30  ;;  %v219_v39 = vadd.f32 %v218_v5, %v115_v20 }
 0x119   :  { %v248_v40 = vpop.f32.mrf.mxu0 }
 0x11a   :  { %3779 = vst [vmem:[#allocation32_spill] sm:$0xff] %v3097_v25  ;;  %v3099_v46 = vadd.f32 %v248_v40, %v115_v20  ;;  %v221_v25 = vadd.f32 %v220_v15, %v119_v30 }
 0x11b   :  { %v250_v47 = vpop.f32.mrf.mxu0 }
 0x11c   :  { %3780 = vst [vmem:[#allocation33_spill] sm:$0xff] %v3099_v46  ;;  %v3101_v1 = vadd.f32 %v250_v47, %v119_v30 }
 0x11d   :  { %v254_v0 = vpop.f32.mrf.mxu0 }
 0x11e   :  { %3781 = vst [vmem:[#allocation34_spill] sm:$0xff] %v3101_v1  ;;  %v3103_v6 = vadd.f32 %v254_v0, %v115_v20 }
 0x11f   :  { %v256_v44 = vpop.f32.mrf.mxu0 }
 0x120   :  { %3782 = vst [vmem:[#allocation35_spill] sm:$0xff] %v3103_v6  ;;  %v3105_v43 = vadd.f32 %v256_v44, %v119_v30 }
 0x121   :  { %v260_v42 = vpop.f32.mrf.mxu0 }
 0x122   :  { %3783 = vst [vmem:[#allocation36_spill] sm:$0xff] %v3105_v43  ;;  %v3107_v41 = vadd.f32 %v260_v42, %v115_v20  ;;  %v3786_v42 = vmov 0.0  }
 0x123   :  { %v262_v3 = vpop.f32.mrf.mxu0 }
 0x124   :  { %3784 = vst [vmem:[#allocation37_spill] sm:$0xff] %v3107_v41  ;;  %v3109_v35 = vadd.f32 %v262_v3, %v119_v30 }
 0x125   :  { %v496_v10 = vpop.f32.mrf.mxu0 }
 0x126   :  { %3785 = vst [vmem:[#allocation38_spill] sm:$0xff] %v3109_v35  ;;  %v501_v40 = vadd.f32 %v496_v10, %v219_v39  ;;  %v2269_v39 = vpop.f32.mrf.mxu1 }
 0x127   :  { %v498_v46 = vpop.f32.mrf.mxu0 }
 0x128   :  { %v502_v38 = vadd.f32 %v498_v46, %v221_v25  ;;  %v331_v5 = vpop.f32.mrf.mxu1 }
 0x12a   :  { %v504_v47 = vmul.f32 0.5, %v502_v38  ;;  %v2272_v15 = vpop.f32.mrf.mxu1 }
 0x12c   :  { %2573 = vtanh.f32 %v504_v47 }
 0x139   :  { %v2574_v1 = vpop.eup %2573 }
 0x13a   :  { %v508_v0 = vadd.f32 1.0, %v2574_v1 }
 0x13c   :  { %v510_v6 = vmul.f32 0.5, %v508_v0  ;;  %v503_v0 = vmul.f32 0.5, %v501_v40  ;;  %v3796_v40 = vld [vmem:[#allocation23_spill] sm:$0xff] }
 0x13e   :  { %v511_v44 = vmul.f32 %v510_v6, %v2952_v45  ;;  %v122_v6 = vsub.s32 2, %v3072_v2  ;;  %2575 = vtanh.f32 %v503_v0 }
 0x140   :  { %2312 = vmatmul.mubr.f32.vlgmr.msra.gmra.mxu1 %v511_v44  ;;  %v3143_v38 = vrot.slane %v3078_v4, %v122_v6  ;;  %v341_v4 = vpop.f32.mrf.mxu1 }
 0x141   :  { %2315 = vmatpush3.msra.mxu1 %v2994_v48  ;;  %2346 = vmatprep.mubr.msk.f32.mxu1 %vm2761_vm1, %v3786_v42 }
 0x142   :  { %2316 = vmatprep.subr.mxu1 %v3786_v42  ;;  %3787 = vst [vmem:[#allocation39_spill] sm:$0xff] %v3143_v38  ;;  %v3150_v2 = vadd.f32 %v2269_v39, %v3143_v38  ;;  %v3154_v20 = vadd.f32 %v2272_v15, %v3143_v38  ;;  %v3157_v30 = vadd.f32 %v341_v4, %v3143_v38  ;;  %v2275_v46 = vpop.f32.mrf.mxu1 }
 0x143   :  { %2317 = vmatpush3.msra.mxu1 %v3000_v49  ;;  %v3160_v1 = vadd.f32 %v2275_v46, %v3143_v38  ;;  %v332_v6 = vadd.f32 %v331_v5, %v3143_v38  ;;  %v3797_v5 = vld [vmem:[#allocation24_spill] sm:$0xff] }
 0x144   :  { %2318 = vmatprep.subr.mxu1 %v3786_v42  ;;  %v351_v25 = vpop.f32.mrf.mxu1 }
 0x145   :  { %2319 = vmatpush3.msra.mxu1 %v3004_v50  ;;  %3788 = vst [vmem:[#allocation40_spill] sm:$0xff] %v3160_v1  ;;  %v3163_v3 = vadd.f32 %v351_v25, %v3143_v38 }
 0x146   :  { %2320 = vmatprep.subr.mxu1 %v3786_v42  ;;  %v2278_v10 = vpop.f32.mrf.mxu1 }
 0x147   :  { %2321 = vmatpush3.msra.mxu1 %v3012_v51  ;;  %3789 = vst [vmem:[#allocation41_spill] sm:$0xff] %v3163_v3  ;;  %v3166_v47 = vadd.f32 %v2278_v10, %v3143_v38 }
 0x148   :  { %2322 = vmatprep.subr.mxu1 %v3786_v42  ;;  %v3168_v44 = vpop.f32.mrf.mxu1 }
 0x149   :  { %2323 = vmatpush3.msra.mxu1 %v3016_v52  ;;  %3790 = vst [vmem:[#allocation42_spill] sm:$0xff] %v3166_v47  ;;  %3791 = vst [vmem:[#allocation43_spill] sm:$0xff] %v3168_v44 }
 0x14a   :  { %2324 = vmatprep.subr.mxu1 %v3786_v42 }
 0x14b   :  { %2325 = vmatpush3.msra.mxu1 %v3024_v53  ;;  %v2576_v46 = vpop.eup %2575 }
 0x14c   :  { %2326 = vmatprep.subr.mxu1 %v3786_v42  ;;  %v507_v35 = vadd.f32 1.0, %v2576_v46 }
 0x14d   :  { %2327 = vmatpush3.msra.mxu1 %v3028_v54 }
 0x14e   :  { %2328 = vmatprep.subr.mxu1 %v3786_v42  ;;  %v509_v43 = vmul.f32 0.5, %v507_v35  ;;  %v3795_v35 = vld [vmem:[#allocation22_spill] sm:$0xff] }
 0x14f   :  { %2329 = vmatpush3.msra.mxu1 %v3034_v55 }
 0x150   :  { %2330 = vmatprep.subr.mxu1 %v3786_v42 }
 0x151   :  { %2331 = vmatpush3.msra.mxu1 %v3038_v56 }
 0x152   :  { %2332 = vmatprep.subr.mxu1 %v3786_v42 }
 0x153   :  { %2333 = vmatpush3.msra.mxu1 %v3042_v57 }
 0x154   :  { %2334 = vmatprep.subr.mxu1 %v3786_v42 }
 0x155   :  { %2335 = vmatpush3.msra.mxu1 %v3046_v58 }
 0x156   :  { %2336 = vmatprep.subr.mxu1 %v3786_v42 }
 0x157   :  { %2337 = vmatpush3.msra.mxu1 %v3050_v59 }
 0x158   :  { %2338 = vmatprep.subr.mxu1 %v3786_v42 }
 0x159   :  { %2339 = vmatpush3.msra.mxu1 %v3054_v60 }
 0x15a   :  { %2340 = vmatprep.subr.mxu1 %v3786_v42 }
 0x15b   :  { %2341 = vmatpush3.msra.mxu1 %v3058_v61 }
 0x15c   :  { %2342 = vmatprep.subr.mxu1 %v3786_v42 }
 0x15d   :  { %2343 = vmatpush3.msra.mxu1 %v3062_v62 }
 0x15e   :  { %2344 = vmatprep.subr.mxu1 %v3786_v42 }
 0x15f   :  { %2345 = vmatpush3.msra.mxu1 %v3066_v63 }
 0x160   :  { %2349 = vmatprep.subr.mxu1 %v3786_v42 }
 0x200   :  { %v594_v39 = vpop.f32.mrf.mxu1 }
 0x201   :  { %v598_v15 = vadd.f32 %v594_v39, %v332_v6  ;;  %v3799_v6 = vld [vmem:[#allocation25_spill] sm:$0xff] }
 0x202   :  { %v2313_v4 = vpop.f32.mrf.mxu1 }
 0x203   :  { %2577 = vtanh.f32 %v598_v15  ;;  %v3800_v4 = vld [vmem:[#allocation26_spill] sm:$0xff] }
 0x210   :  { %v2578_v41 = vpop.eup %2577 }
 0x211   :  { %v600_v25 = vsub.f32 %v2578_v41, %v2952_v45  ;;  %v3792_v41 = vld [vmem:[#allocation19_spill] sm:$0xff] }
 0x213   :  { %v601_v1 = vmul.f32 %v600_v25, %v509_v43  ;;  %v3793_v43 = vld [vmem:[#allocation20_spill] sm:$0xff] }
 0x215   :  { %v3173_v10 = vadd.f32 %v601_v1, %v2952_v45  ;;  %v3794_v45 = vld [vmem:[#allocation21_spill] sm:$0xff]  ;;  %v3798_v1 = vld [vmem:[#allocation18_spill] sm:$0xff] }
 0x217   :  { %705 = vmatmul.mubr.f32.vlgmr.msra.gmra.mxu0 %v3173_v10  ;;  %603 = vst [vmem:[#allocation13] sm:$0xff] %v3173_v10 }
 0x218   :  { %852 = vmatpush1.msra.mxu0 %v2823_v7  ;;  %915 = vmatprep.mubr.f32.mxu0 %v3786_v42 }
 0x219   :  { %853 = vmatprep.subr.mxu0 %v2825_v8 }
 0x21a   :  { %854 = vmatpush1.msra.mxu0 %v2829_v9 }
 0x21b   :  { %855 = vmatprep.subr.mxu0 %v2835_v11 }
 0x21c   :  { %856 = vmatpush1.msra.mxu0 %v2838_v12 }
 0x21d   :  { %857 = vmatprep.subr.mxu0 %v2841_v13 }
 0x21e   :  { %858 = vmatpush1.msra.mxu0 %v2846_v14 }
 0x21f   :  { %859 = vmatprep.subr.mxu0 %v2852_v16 }
 0x220   :  { %860 = vmatpush1.msra.mxu0 %v2855_v17 }
 0x221   :  { %861 = vmatprep.subr.mxu0 %v2858_v18 }
 0x222   :  { %862 = vmatpush1.msra.mxu0 %v2863_v19 }
 0x223   :  { %863 = vmatprep.subr.mxu0 %v2869_v21 }
 0x224   :  { %864 = vmatpush1.msra.mxu0 %v2872_v22 }
 0x225   :  { %865 = vmatprep.subr.mxu0 %v2875_v23 }
 0x226   :  { %866 = vmatpush1.msra.mxu0 %v2880_v24 }
 0x227   :  { %867 = vmatprep.subr.mxu0 %v2886_v26 }
 0x228   :  { %868 = vmatpush1.msra.mxu0 %v2889_v27 }
 0x229   :  { %869 = vmatprep.subr.mxu0 %v2892_v28 }
 0x22a   :  { %870 = vmatpush1.msra.mxu0 %v2897_v29 }
 0x22b   :  { %871 = vmatprep.subr.mxu0 %v2903_v31 }
 0x22c   :  { %872 = vmatpush1.msra.mxu0 %v2906_v32 }
 0x22d   :  { %873 = vmatprep.subr.mxu0 %v2909_v33 }
 0x22e   :  { %874 = vmatpush1.msra.mxu0 %v2914_v34 }
 0x22f   :  { %875 = vmatprep.subr.mxu0 %v2920_v36 }
 0x230   :  { %876 = vmatpush1.msra.mxu0 %v2923_v37 }
 0x231   :  { %877 = vmatprep.subr.mxu0 %v3792_v41 }
 0x232   :  { %878 = vmatpush1.msra.mxu0 %v3793_v43 }
 0x233   :  { %879 = vmatprep.subr.mxu0 %v3794_v45 }
 0x234   :  { %880 = vmatpush1.msra.mxu0 %v3795_v35 }
 0x235   :  { %881 = vmatprep.subr.mxu0 %v3796_v40 }
 0x236   :  { %882 = vmatpush1.msra.mxu0 %v3797_v5 }
 0x237   :  { %1062 = vmatprep.subr.mxu0 %v3798_v1 }
 0x2d7   :  { %v706_v0 = vpop.f32.mrf.mxu0 }
 0x2d8   :  { %v711_v39 = vadd.f32 %v706_v0, %v3799_v6 }
 0x2d9   :  { %v708_v15 = vpop.f32.mrf.mxu0 }
 0x2da   :  { %v712_v46 = vadd.f32 %v708_v15, %v3800_v4 }
 0x2dc   :  { %v714_v25 = vmul.f32 0.5, %v712_v46 }
 0x2de   :  { %2579 = vtanh.f32 %v714_v25 }
 0x2eb   :  { %v2580_v47 = vpop.eup %2579 }
 0x2ec   :  { %v718_v44 = vadd.f32 1.0, %v2580_v47 }
 0x2ee   :  { %v720_v38 = vmul.f32 0.5, %v718_v44 }
 0x2f0   :  { %v721_v3 = vmul.f32 %v720_v38, %v3173_v10  ;;  %v713_v38 = vmul.f32 0.5, %v711_v39  ;;  %v3389_v39 = vld [vmem:[#allocation10 + $0x70] sm:$0xff] }
 0x2f2   :  { %2347 = vmatmul.mubr.f32.vlgmr.msra.gmra.mxu1 %v721_v3  ;;  %2581 = vtanh.f32 %v713_v38  ;;  %v3392_v38 = vld [vmem:[#allocation10 + $0x68] sm:$0xff] }
 0x2f3   :  { %2350 = vmatpush3.msra.mxu1 %v2994_v48  ;;  %2381 = vmatprep.mubr.msk.f32.mxu1 %vm2761_vm1, %v3786_v42 }
 0x2f4   :  { %2351 = vmatprep.subr.mxu1 %v3786_v42 }
 0x2f5   :  { %2352 = vmatpush3.msra.mxu1 %v3000_v49 }
 0x2f6   :  { %2353 = vmatprep.subr.mxu1 %v3786_v42 }
 0x2f7   :  { %2354 = vmatpush3.msra.mxu1 %v3004_v50 }
 0x2f8   :  { %2355 = vmatprep.subr.mxu1 %v3786_v42 }
 0x2f9   :  { %2356 = vmatpush3.msra.mxu1 %v3012_v51 }
 0x2fa   :  { %2357 = vmatprep.subr.mxu1 %v3786_v42 }
 0x2fb   :  { %2358 = vmatpush3.msra.mxu1 %v3016_v52 }
 0x2fc   :  { %2359 = vmatprep.subr.mxu1 %v3786_v42 }
 0x2fd   :  { %2360 = vmatpush3.msra.mxu1 %v3024_v53 }
 0x2fe   :  { %2361 = vmatprep.subr.mxu1 %v3786_v42 }
 0x2ff   :  { %2362 = vmatpush3.msra.mxu1 %v3028_v54  ;;  %v2582_v1 = vpop.eup %2581 }
 0x300   :  { %2363 = vmatprep.subr.mxu1 %v3786_v42  ;;  %v717_v0 = vadd.f32 1.0, %v2582_v1  ;;  %v3404_v1 = vld [vmem:[#allocation10 + $0x48] sm:$0xff] }
 0x301   :  { %2364 = vmatpush3.msra.mxu1 %v3034_v55 }
 0x302   :  { %2365 = vmatprep.subr.mxu1 %v3786_v42  ;;  %v719_v15 = vmul.f32 0.5, %v717_v0  ;;  %v3407_v0 = vld [vmem:[#allocation10 + $0x40] sm:$0xff] }
 0x303   :  { %2366 = vmatpush3.msra.mxu1 %v3038_v56 }
 0x304   :  { %2367 = vmatprep.subr.mxu1 %v3786_v42 }
 0x305   :  { %2368 = vmatpush3.msra.mxu1 %v3042_v57 }
 0x306   :  { %2369 = vmatprep.subr.mxu1 %v3786_v42 }
 0x307   :  { %2370 = vmatpush3.msra.mxu1 %v3046_v58 }
 0x308   :  { %2371 = vmatprep.subr.mxu1 %v3786_v42 }
 0x309   :  { %2372 = vmatpush3.msra.mxu1 %v3050_v59 }
 0x30a   :  { %2373 = vmatprep.subr.mxu1 %v3786_v42 }
 0x30b   :  { %2374 = vmatpush3.msra.mxu1 %v3054_v60 }
 0x30c   :  { %2375 = vmatprep.subr.mxu1 %v3786_v42 }
 0x30d   :  { %2376 = vmatpush3.msra.mxu1 %v3058_v61 }
 0x30e   :  { %2377 = vmatprep.subr.mxu1 %v3786_v42 }
 0x30f   :  { %2378 = vmatpush3.msra.mxu1 %v3062_v62 }
 0x310   :  { %2379 = vmatprep.subr.mxu1 %v3786_v42 }
 0x311   :  { %2380 = vmatpush3.msra.mxu1 %v3066_v63 }
 0x312   :  { %2384 = vmatprep.subr.mxu1 %v3786_v42 }
 0x3b2   :  { %v804_v3 = vpop.f32.mrf.mxu1 }
 0x3b3   :  { %v808_v47 = vadd.f32 %v804_v3, %v3150_v2  ;;  %v3395_v3 = vld [vmem:[#allocation10 + $0x60] sm:$0xff] }
 0x3b4   :  { %v2348_v44 = vpop.f32.mrf.mxu1 }
 0x3b5   :  { %2583 = vtanh.f32 %v808_v47  ;;  %v3398_v47 = vld [vmem:[#allocation10 + $0x58] sm:$0xff]  ;;  %v3401_v44 = vld [vmem:[#allocation10 + $0x50] sm:$0xff] }
 0x3c2   :  { %v2584_v6 = vpop.eup %2583 }
 0x3c3   :  { %v810_v4 = vsub.f32 %v2584_v6, %v3173_v10  ;;  %v3410_v6 = vld [vmem:[#allocation10 + $0x38] sm:$0xff] }
 0x3c5   :  { %v811_v46 = vmul.f32 %v810_v4, %v719_v15  ;;  %v3413_v15 = vld [vmem:[#allocation10 + $0x30] sm:$0xff]  ;;  %v3416_v4 = vld [vmem:[#allocation10 + $0x28] sm:$0xff] }
 0x3c7   :  { %v3250_v25 = vadd.f32 %v811_v46, %v3173_v10  ;;  %v3368_v10 = vld [vmem:[#allocation10 + $0xa8] sm:$0xff]  ;;  %v3419_v46 = vld [vmem:[#allocation10 + $0x20] sm:$0xff] }
 0x3c9   :  { %916 = vmatmul.mubr.f32.vlgmr.msra.gmra.mxu0 %v3250_v25  ;;  %814 = vst [vmem:[#allocation13 + $0x8] sm:$0xff] %v3250_v25 }
 0x3ca   :  { %1063 = vmatpush1.msra.mxu0 %v2823_v7  ;;  %1126 = vmatprep.mubr.f32.mxu0 %v3786_v42 }
 0x3cb   :  { %1064 = vmatprep.subr.mxu0 %v2825_v8  ;;  %v3801_v8 = vld [vmem:[#allocation27_spill] sm:$0xff] }
 0x3cc   :  { %1065 = vmatpush1.msra.mxu0 %v2829_v9 }
 0x3cd   :  { %1066 = vmatprep.subr.mxu0 %v2835_v11 }
 0x3ce   :  { %1067 = vmatpush1.msra.mxu0 %v2838_v12  ;;  %v3802_v12 = vld [vmem:[#allocation28_spill] sm:$0xff] }
 0x3cf   :  { %1068 = vmatprep.subr.mxu0 %v2841_v13 }
 0x3d0   :  { %1069 = vmatpush1.msra.mxu0 %v2846_v14 }
 0x3d1   :  { %1070 = vmatprep.subr.mxu0 %v2852_v16 }
 0x3d2   :  { %1071 = vmatpush1.msra.mxu0 %v2855_v17 }
 0x3d3   :  { %1072 = vmatprep.subr.mxu0 %v2858_v18 }
 0x3d4   :  { %1073 = vmatpush1.msra.mxu0 %v2863_v19 }
 0x3d5   :  { %1074 = vmatprep.subr.mxu0 %v2869_v21 }
 0x3d6   :  { %1075 = vmatpush1.msra.mxu0 %v2872_v22 }
 0x3d7   :  { %1076 = vmatprep.subr.mxu0 %v2875_v23 }
 0x3d8   :  { %1077 = vmatpush1.msra.mxu0 %v2880_v24 }
 0x3d9   :  { %1078 = vmatprep.subr.mxu0 %v2886_v26 }
 0x3da   :  { %1079 = vmatpush1.msra.mxu0 %v2889_v27 }
 0x3db   :  { %1080 = vmatprep.subr.mxu0 %v2892_v28 }
 0x3dc   :  { %1081 = vmatpush1.msra.mxu0 %v2897_v29 }
 0x3dd   :  { %1082 = vmatprep.subr.mxu0 %v2903_v31 }
 0x3de   :  { %1083 = vmatpush1.msra.mxu0 %v2906_v32 }
 0x3df   :  { %1084 = vmatprep.subr.mxu0 %v2909_v33 }
 0x3e0   :  { %1085 = vmatpush1.msra.mxu0 %v2914_v34  ;;  %v3331_v34 = vld [vmem:[#allocation10 + $0xf8] sm:$0xff] }
 0x3e1   :  { %1086 = vmatprep.subr.mxu0 %v2920_v36  ;;  %v3333_v36 = vld [vmem:[#allocation10 + $0xf0] sm:$0xff] }
 0x3e2   :  { %1087 = vmatpush1.msra.mxu0 %v2923_v37  ;;  %v3335_v37 = vld [vmem:[#allocation10 + $0xe8] sm:$0xff] }
 0x3e3   :  { %1088 = vmatprep.subr.mxu0 %v3792_v41  ;;  %v3371_v41 = vld [vmem:[#allocation10 + $0xa0] sm:$0xff] }
 0x3e4   :  { %1089 = vmatpush1.msra.mxu0 %v3793_v43  ;;  %v3374_v43 = vld [vmem:[#allocation10 + $0x98] sm:$0xff] }
 0x3e5   :  { %1090 = vmatprep.subr.mxu0 %v3794_v45  ;;  %v3377_v45 = vld [vmem:[#allocation10 + $0x90] sm:$0xff] }
 0x3e6   :  { %1091 = vmatpush1.msra.mxu0 %v3795_v35  ;;  %v3380_v35 = vld [vmem:[#allocation10 + $0x88] sm:$0xff] }
 0x3e7   :  { %1092 = vmatprep.subr.mxu0 %v3796_v40  ;;  %v3383_v40 = vld [vmem:[#allocation10 + $0x80] sm:$0xff] }
 0x3e8   :  { %1093 = vmatpush1.msra.mxu0 %v3797_v5  ;;  %v3386_v5 = vld [vmem:[#allocation10 + $0x78] sm:$0xff] }
 0x3e9   :  { %1273 = vmatprep.subr.mxu0 %v3331_v34 }
 0x489   :  { %v917_v7 = vpop.f32.mrf.mxu0 }
 0x48a   :  { %v922_v9 = vadd.f32 %v917_v7, %v3801_v8  ;;  %v3423_v7 = vld [vmem:[#allocation10 + $0x10] sm:$0xff]  ;;  %v3426_v8 = vld [vmem:[#allocation10 + $0x8] sm:$0xff] }
 0x48b   :  { %v919_v11 = vpop.f32.mrf.mxu0 }
 0x48c   :  { %v923_v13 = vadd.f32 %v919_v11, %v3802_v12  ;;  %v924_v21 = vmul.f32 0.5, %v922_v9  ;;  %v3429_v9 = vld [vmem:[#allocation10] sm:$0xff]  ;;  %v3434_v11 = vld [vmem:[#allocation12 + $0x78] sm:$0xff]  ;;  %v3436_v12 = vld [vmem:[#allocation12 + $0x70] sm:$0xff] }
 0x48e   :  { %v925_v14 = vmul.f32 0.5, %v923_v13 }
 0x490   :  { %2585 = vtanh.f32 %v925_v14 }
 0x491   :  { %2587 = vtanh.f32 %v924_v21 }
 0x49d   :  { %v2586_v16 = vpop.eup %2585 }
 0x49e   :  { %v929_v17 = vadd.f32 1.0, %v2586_v16  ;;  %v2588_v26 = vpop.eup %2587 }
 0x49f   :  { %v928_v27 = vadd.f32 1.0, %v2588_v26 }
 0x4a0   :  { %v931_v18 = vmul.f32 0.5, %v929_v17 }
 0x4a1   :  { %v930_v29 = vmul.f32 0.5, %v928_v27  ;;  %v3488_v27 = vld [vmem:[#allocation12 + $0x60] sm:$0xff] }
 0x4a2   :  { %v932_v19 = vmul.f32 %v931_v18, %v3250_v25 }
 0x4a4   :  { %2382 = vmatmul.mubr.f32.vlgmr.msra.gmra.mxu1 %v932_v19 }
 0x4a5   :  { %2385 = vmatpush3.msra.mxu1 %v2994_v48  ;;  %2416 = vmatprep.mubr.msk.f32.mxu1 %vm2761_vm1, %v3786_v42  ;;  %v3338_v48 = vld [vmem:[#allocation10 + $0xe0] sm:$0xff] }
 0x4a6   :  { %2386 = vmatprep.subr.mxu1 %v3786_v42 }
 0x4a7   :  { %2387 = vmatpush3.msra.mxu1 %v3000_v49  ;;  %v3341_v49 = vld [vmem:[#allocation10 + $0xd8] sm:$0xff] }
 0x4a8   :  { %2388 = vmatprep.subr.mxu1 %v3786_v42 }
 0x4a9   :  { %2389 = vmatpush3.msra.mxu1 %v3004_v50  ;;  %v3344_v50 = vld [vmem:[#allocation10 + $0xd0] sm:$0xff] }
 0x4aa   :  { %2390 = vmatprep.subr.mxu1 %v3786_v42 }
 0x4ab   :  { %2391 = vmatpush3.msra.mxu1 %v3012_v51  ;;  %v3347_v51 = vld [vmem:[#allocation10 + $0xc8] sm:$0xff] }
 0x4ac   :  { %2392 = vmatprep.subr.mxu1 %v3786_v42 }
 0x4ad   :  { %2393 = vmatpush3.msra.mxu1 %v3016_v52  ;;  %v3350_v52 = vld [vmem:[#allocation10 + $0xc0] sm:$0xff] }
 0x4ae   :  { %2394 = vmatprep.subr.mxu1 %v3786_v42 }
 0x4af   :  { %2395 = vmatpush3.msra.mxu1 %v3024_v53  ;;  %v3353_v53 = vld [vmem:[#allocation10 + $0xb8] sm:$0xff] }
 0x4b0   :  { %2396 = vmatprep.subr.mxu1 %v3786_v42 }
 0x4b1   :  { %2397 = vmatpush3.msra.mxu1 %v3028_v54 }
 0x4b2   :  { %2398 = vmatprep.subr.mxu1 %v3786_v42 }
 0x4b3   :  { %2399 = vmatpush3.msra.mxu1 %v3034_v55  ;;  %v3803_v55 = vld [vmem:[#allocation29_spill] sm:$0xff] }
 0x4b4   :  { %2400 = vmatprep.subr.mxu1 %v3786_v42 }
 0x4b5   :  { %2401 = vmatpush3.msra.mxu1 %v3038_v56 }
 0x4b6   :  { %2402 = vmatprep.subr.mxu1 %v3786_v42 }
 0x4b7   :  { %2403 = vmatpush3.msra.mxu1 %v3042_v57 }
 0x4b8   :  { %2404 = vmatprep.subr.mxu1 %v3786_v42 }
 0x4b9   :  { %2405 = vmatpush3.msra.mxu1 %v3046_v58  ;;  %v3804_v58 = vld [vmem:[#allocation30_spill] sm:$0xff] }
 0x4ba   :  { %2406 = vmatprep.subr.mxu1 %v3786_v42 }
 0x4bb   :  { %2407 = vmatpush3.msra.mxu1 %v3050_v59 }
 0x4bc   :  { %2408 = vmatprep.subr.mxu1 %v3786_v42 }
 0x4bd   :  { %2409 = vmatpush3.msra.mxu1 %v3054_v60 }
 0x4be   :  { %2410 = vmatprep.subr.mxu1 %v3786_v42 }
 0x4bf   :  { %2411 = vmatpush3.msra.mxu1 %v3058_v61 }
 0x4c0   :  { %2412 = vmatprep.subr.mxu1 %v3786_v42 }
 0x4c1   :  { %2413 = vmatpush3.msra.mxu1 %v3062_v62 }
 0x4c2   :  { %2414 = vmatprep.subr.mxu1 %v3786_v42 }
 0x4c3   :  { %2415 = vmatpush3.msra.mxu1 %v3066_v63 }
 0x4c4   :  { %2419 = vmatprep.subr.mxu1 %v3786_v42 }
 0x564   :  { %v1015_v22 = vpop.f32.mrf.mxu1 }
 0x565   :  { %v1019_v23 = vadd.f32 %v1015_v22, %v3157_v30  ;;  %v3365_v30 = vld [vmem:[#allocation10 + $0xb0] sm:$0xff] }
 0x566   :  { %v2383_v24 = vpop.f32.mrf.mxu1 }
 0x567   :  { %2589 = vtanh.f32 %v1019_v23 }
 0x574   :  { %v2590_v28 = vpop.eup %2589 }
 0x575   :  { %v1021_v31 = vsub.f32 %v2590_v28, %v3250_v25  ;;  %v3492_v28 = vld [vmem:[#allocation12 + $0x58] sm:$0xff] }
 0x577   :  { %v1022_v32 = vmul.f32 %v1021_v31, %v930_v29  ;;  %v3496_v29 = vld [vmem:[#allocation12 + $0x50] sm:$0xff]  ;;  %v3500_v31 = vld [vmem:[#allocation12 + $0x48] sm:$0xff] }
 0x579   :  { %v3326_v33 = vadd.f32 %v1022_v32, %v3250_v25  ;;  %v3421_v25 = vld [vmem:[#allocation10 + $0x18] sm:$0xff]  ;;  %v3504_v32 = vld [vmem:[#allocation12 + $0x40] sm:$0xff] }
 0x57b   :  { %1127 = vmatmul.mubr.f32.vlgmr.msra.gmra.mxu0 %v3326_v33  ;;  %1025 = vst [vmem:[#allocation13 + $0x10] sm:$0xff] %v3326_v33 }
 0x57c   :  { %1337 = vmatprep.mubr.f32.mxu0 %v3786_v42  ;;  %1274 = vmatpush1.msra.mxu0 %v3333_v36 }
 0x57d   :  { %1275 = vmatprep.subr.mxu0 %v3335_v37 }
 0x57e   :  { %1276 = vmatpush1.msra.mxu0 %v3338_v48 }
 0x57f   :  { %1277 = vmatprep.subr.mxu0 %v3341_v49 }
 0x580   :  { %1278 = vmatpush1.msra.mxu0 %v3344_v50 }
 0x581   :  { %1279 = vmatprep.subr.mxu0 %v3347_v51 }
 0x582   :  { %1280 = vmatpush1.msra.mxu0 %v3350_v52 }
 0x583   :  { %1281 = vmatprep.subr.mxu0 %v3353_v53 }
 0x584   :  { %1282 = vmatpush1.msra.mxu0 %v3365_v30 }
 0x585   :  { %1283 = vmatprep.subr.mxu0 %v3368_v10 }
 0x586   :  { %1284 = vmatpush1.msra.mxu0 %v3371_v41 }
 0x587   :  { %1285 = vmatprep.subr.mxu0 %v3374_v43 }
 0x588   :  { %1286 = vmatpush1.msra.mxu0 %v3377_v45 }
 0x589   :  { %1287 = vmatprep.subr.mxu0 %v3380_v35 }
 0x58a   :  { %1288 = vmatpush1.msra.mxu0 %v3383_v40 }
 0x58b   :  { %1289 = vmatprep.subr.mxu0 %v3386_v5 }
 0x58c   :  { %1290 = vmatpush1.msra.mxu0 %v3389_v39 }
 0x58d   :  { %1291 = vmatprep.subr.mxu0 %v3392_v38 }
 0x58e   :  { %1292 = vmatpush1.msra.mxu0 %v3395_v3 }
 0x58f   :  { %1293 = vmatprep.subr.mxu0 %v3398_v47 }
 0x590   :  { %1294 = vmatpush1.msra.mxu0 %v3401_v44 }
 0x591   :  { %1295 = vmatprep.subr.mxu0 %v3404_v1 }
 0x592   :  { %1296 = vmatpush1.msra.mxu0 %v3407_v0 }
 0x593   :  { %1297 = vmatprep.subr.mxu0 %v3410_v6 }
 0x594   :  { %1298 = vmatpush1.msra.mxu0 %v3413_v15 }
 0x595   :  { %1299 = vmatprep.subr.mxu0 %v3416_v4 }
 0x596   :  { %1300 = vmatpush1.msra.mxu0 %v3419_v46 }
 0x597   :  { %1301 = vmatprep.subr.mxu0 %v3421_v25 }
 0x598   :  { %1302 = vmatpush1.msra.mxu0 %v3423_v7 }
 0x599   :  { %1303 = vmatprep.subr.mxu0 %v3426_v8 }
 0x59a   :  { %1304 = vmatpush1.msra.mxu0 %v3429_v9 }
 0x59b   :  { %1484 = vmatprep.subr.mxu0 %v3331_v34 }
 0x63b   :  { %v1128_v54 = vpop.f32.mrf.mxu0 }
 0x63c   :  { %v3359_v56 = vadd.f32 %v1128_v54, %v3803_v55  ;;  %v3512_v54 = vld [vmem:[#allocation12 + $0x30] sm:$0xff]  ;;  %v3516_v55 = vld [vmem:[#allocation12 + $0x28] sm:$0xff] }
 0x63d   :  { %v1130_v57 = vpop.f32.mrf.mxu0 }
 0x63e   :  { %v1134_v59 = vadd.f32 %v1130_v57, %v3804_v58  ;;  %v1135_v13 = vmul.f32 0.5, %v3359_v56  ;;  %v3520_v56 = vld [vmem:[#allocation12 + $0x20] sm:$0xff]  ;;  %v3524_v57 = vld [vmem:[#allocation12 + $0x18] sm:$0xff]  ;;  %v3528_v58 = vld [vmem:[#allocation12 + $0x10] sm:$0xff] }
 0x640   :  { %v1136_v60 = vmul.f32 0.5, %v1134_v59  ;;  %v3532_v59 = vld [vmem:[#allocation12 + $0x8] sm:$0xff] }
 0x642   :  { %2591 = vtanh.f32 %v1136_v60  ;;  %v3534_v60 = vld [vmem:[#allocation12] sm:$0xff] }
 0x643   :  { %2593 = vtanh.f32 %v1135_v13  ;;  %v3806_v13 = vld [vmem:[#allocation32_spill] sm:$0xff] }
 0x64f   :  { %v2592_v61 = vpop.eup %2591 }
 0x650   :  { %v1140_v62 = vadd.f32 1.0, %v2592_v61  ;;  %v2594_v18 = vpop.eup %2593 }
 0x651   :  { %v1139_v19 = vadd.f32 1.0, %v2594_v18 }
 0x652   :  { %v1142_v63 = vmul.f32 0.5, %v1140_v62  ;;  %v3805_v62 = vld [vmem:[#allocation31_spill] sm:$0xff] }
 0x653   :  { %v1141_v22 = vmul.f32 0.5, %v1139_v19 }
 0x654   :  { %v1143_v2 = vmul.f32 %v1142_v63, %v3326_v33 }
 0x656   :  { %2417 = vmatmul.mubr.f32.vlgmr.msra.gmra.mxu1 %v1143_v2 }
 0x657   :  { %2451 = vmatprep.mubr.msk.f32.mxu1 %vm2761_vm1, %v3786_v42  ;;  %2420 = vmatpush3.msra.mxu1 %v3434_v11 }
 0x658   :  { %2421 = vmatprep.subr.mxu1 %v3786_v42 }
 0x659   :  { %2422 = vmatpush3.msra.mxu1 %v3436_v12 }
 0x65a   :  { %2423 = vmatprep.subr.mxu1 %v3786_v42 }
 0x716   :  { %v1226_v14 = vpop.f32.mrf.mxu1 }
 0x717   :  { %v1230_v16 = vadd.f32 %v1226_v14, %v3154_v20  ;;  %v3484_v20 = vld [vmem:[#allocation12 + $0x68] sm:$0xff] }
 0x718   :  { %v2418_v17 = vpop.f32.mrf.mxu1  ;;  %2424 = vmatpush3.msra.mxu1 %v3484_v20 }
 0x719   :  { %2595 = vtanh.f32 %v1230_v16  ;;  %2425 = vmatprep.subr.mxu1 %v3786_v42 }
 0x71a   :  { %2426 = vmatpush3.msra.mxu1 %v3488_v27 }
 0x71b   :  { %2427 = vmatprep.subr.mxu1 %v3786_v42 }
 0x71c   :  { %2428 = vmatpush3.msra.mxu1 %v3492_v28 }
 0x71d   :  { %2429 = vmatprep.subr.mxu1 %v3786_v42 }
 0x71e   :  { %2430 = vmatpush3.msra.mxu1 %v3496_v29 }
 0x71f   :  { %2431 = vmatprep.subr.mxu1 %v3786_v42 }
 0x720   :  { %2432 = vmatpush3.msra.mxu1 %v3500_v31 }
 0x721   :  { %2433 = vmatprep.subr.mxu1 %v3786_v42 }
 0x722   :  { %2434 = vmatpush3.msra.mxu1 %v3504_v32 }
 0x723   :  { %2435 = vmatprep.subr.mxu1 %v3786_v42 }
 0x726   :  { %v2596_v21 = vpop.eup %2595 }
 0x727   :  { %v1232_v23 = vsub.f32 %v2596_v21, %v3326_v33 }
 0x729   :  { %v1233_v24 = vmul.f32 %v1232_v23, %v1141_v22 }
 0x72b   :  { %v3447_v26 = vadd.f32 %v1233_v24, %v3326_v33  ;;  %v3508_v33 = vld [vmem:[#allocation12 + $0x38] sm:$0xff] }
 0x72c   :  { %2436 = vmatpush3.msra.mxu1 %v3508_v33  ;;  %v3807_v24 = vld [vmem:[#allocation41_spill] sm:$0xff] }
 0x72d   :  { %1338 = vmatmul.mubr.f32.vlgmr.msra.gmra.mxu0 %v3447_v26  ;;  %1236 = vst [vmem:[#allocation13 + $0x18] sm:$0xff] %v3447_v26  ;;  %2437 = vmatprep.subr.mxu1 %v3786_v42 }
 0x72e   :  { %1485 = vmatpush1.msra.mxu0 %v3333_v36  ;;  %1548 = vmatprep.mubr.f32.mxu0 %v3786_v42 }
 0x72f   :  { %1486 = vmatprep.subr.mxu0 %v3335_v37  ;;  %2438 = vmatpush3.msra.mxu1 %v3512_v54 }
 0x730   :  { %1487 = vmatpush1.msra.mxu0 %v3338_v48  ;;  %2439 = vmatprep.subr.mxu1 %v3786_v42 }
 0x731   :  { %1488 = vmatprep.subr.mxu0 %v3341_v49  ;;  %2440 = vmatpush3.msra.mxu1 %v3516_v55 }
 0x732   :  { %1489 = vmatpush1.msra.mxu0 %v3344_v50  ;;  %2441 = vmatprep.subr.mxu1 %v3786_v42 }
 0x733   :  { %1490 = vmatprep.subr.mxu0 %v3347_v51  ;;  %2442 = vmatpush3.msra.mxu1 %v3520_v56 }
 0x734   :  { %1491 = vmatpush1.msra.mxu0 %v3350_v52  ;;  %2443 = vmatprep.subr.mxu1 %v3786_v42 }
 0x735   :  { %1492 = vmatprep.subr.mxu0 %v3353_v53  ;;  %2444 = vmatpush3.msra.mxu1 %v3524_v57 }
 0x736   :  { %1493 = vmatpush1.msra.mxu0 %v3365_v30  ;;  %2445 = vmatprep.subr.mxu1 %v3786_v42 }
 0x737   :  { %1494 = vmatprep.subr.mxu0 %v3368_v10  ;;  %2446 = vmatpush3.msra.mxu1 %v3528_v58 }
 0x738   :  { %1495 = vmatpush1.msra.mxu0 %v3371_v41  ;;  %2447 = vmatprep.subr.mxu1 %v3786_v42 }
 0x739   :  { %1496 = vmatprep.subr.mxu0 %v3374_v43  ;;  %2448 = vmatpush3.msra.mxu1 %v3532_v59 }
 0x73a   :  { %1497 = vmatpush1.msra.mxu0 %v3377_v45  ;;  %2449 = vmatprep.subr.mxu1 %v3786_v42 }
 0x73b   :  { %1498 = vmatprep.subr.mxu0 %v3380_v35  ;;  %2450 = vmatpush3.msra.mxu1 %v3534_v60 }
 0x73c   :  { %1499 = vmatpush1.msra.mxu0 %v3383_v40  ;;  %2454 = vmatprep.subr.mxu1 %v3786_v42 }
 0x73d   :  { %1500 = vmatprep.subr.mxu0 %v3386_v5 }
 0x73e   :  { %1501 = vmatpush1.msra.mxu0 %v3389_v39 }
 0x73f   :  { %1502 = vmatprep.subr.mxu0 %v3392_v38 }
 0x740   :  { %1503 = vmatpush1.msra.mxu0 %v3395_v3 }
 0x741   :  { %1504 = vmatprep.subr.mxu0 %v3398_v47 }
 0x742   :  { %1505 = vmatpush1.msra.mxu0 %v3401_v44 }
 0x743   :  { %1506 = vmatprep.subr.mxu0 %v3404_v1 }
 0x744   :  { %1507 = vmatpush1.msra.mxu0 %v3407_v0 }
 0x745   :  { %1508 = vmatprep.subr.mxu0 %v3410_v6 }
 0x746   :  { %1509 = vmatpush1.msra.mxu0 %v3413_v15 }
 0x747   :  { %1510 = vmatprep.subr.mxu0 %v3416_v4 }
 0x748   :  { %1511 = vmatpush1.msra.mxu0 %v3419_v46 }
 0x749   :  { %1512 = vmatprep.subr.mxu0 %v3421_v25 }
 0x74a   :  { %1513 = vmatpush1.msra.mxu0 %v3423_v7 }
 0x74b   :  { %1514 = vmatprep.subr.mxu0 %v3426_v8 }
 0x74c   :  { %1515 = vmatpush1.msra.mxu0 %v3429_v9 }
 0x74d   :  { %1695 = vmatprep.subr.mxu0 %v3331_v34 }
 0x7ed   :  { %v1339_v61 = vpop.f32.mrf.mxu0 }
 0x7ee   :  { %v1344_v63 = vadd.f32 %v1339_v61, %v3805_v62 }
 0x7ef   :  { %v1341_v2 = vpop.f32.mrf.mxu0 }
 0x7f0   :  { %v1345_v14 = vadd.f32 %v1341_v2, %v3806_v13  ;;  %v1346_v22 = vmul.f32 0.5, %v1344_v63  ;;  %v3808_v63 = vld [vmem:[#allocation33_spill] sm:$0xff] }
 0x7f2   :  { %v1347_v16 = vmul.f32 0.5, %v1345_v14 }
 0x7f4   :  { %2597 = vtanh.f32 %v1347_v16 }
 0x7f5   :  { %2599 = vtanh.f32 %v1346_v22 }
 0x801   :  { %v2598_v17 = vpop.eup %2597 }
 0x802   :  { %v1351_v18 = vadd.f32 1.0, %v2598_v17  ;;  %v2600_v2 = vpop.eup %2599 }
 0x803   :  { %v1350_v13 = vadd.f32 1.0, %v2600_v2 }
 0x804   :  { %v1353_v19 = vmul.f32 0.5, %v1351_v18 }
 0x805   :  { %v1352_v16 = vmul.f32 0.5, %v1350_v13 }
 0x806   :  { %v1354_v21 = vmul.f32 %v1353_v19, %v3447_v26 }
 0x808   :  { %2452 = vmatmul.mubr.f32.vlgmr.msra.gmra.mxu1 %v1354_v21 }
 0x809   :  { %2455 = vmatpush3.msra.mxu1 %v3434_v11  ;;  %2486 = vmatprep.mubr.msk.f32.mxu1 %vm2761_vm1, %v3786_v42 }
 0x80a   :  { %2456 = vmatprep.subr.mxu1 %v3786_v42 }
 0x80b   :  { %2457 = vmatpush3.msra.mxu1 %v3436_v12 }
 0x80c   :  { %2458 = vmatprep.subr.mxu1 %v3786_v42 }
 0x80d   :  { %2459 = vmatpush3.msra.mxu1 %v3484_v20 }
 0x80e   :  { %2460 = vmatprep.subr.mxu1 %v3786_v42 }
 0x80f   :  { %2461 = vmatpush3.msra.mxu1 %v3488_v27 }
 0x810   :  { %2462 = vmatprep.subr.mxu1 %v3786_v42 }
 0x811   :  { %2463 = vmatpush3.msra.mxu1 %v3492_v28 }
 0x812   :  { %2464 = vmatprep.subr.mxu1 %v3786_v42 }
 0x813   :  { %2465 = vmatpush3.msra.mxu1 %v3496_v29 }
 0x814   :  { %2466 = vmatprep.subr.mxu1 %v3786_v42 }
 0x815   :  { %2467 = vmatpush3.msra.mxu1 %v3500_v31 }
 0x816   :  { %2468 = vmatprep.subr.mxu1 %v3786_v42 }
 0x817   :  { %2469 = vmatpush3.msra.mxu1 %v3504_v32 }
 0x818   :  { %2470 = vmatprep.subr.mxu1 %v3786_v42 }
 0x819   :  { %2471 = vmatpush3.msra.mxu1 %v3508_v33 }
 0x81a   :  { %2472 = vmatprep.subr.mxu1 %v3786_v42 }
 0x81b   :  { %2473 = vmatpush3.msra.mxu1 %v3512_v54 }
 0x81c   :  { %2474 = vmatprep.subr.mxu1 %v3786_v42 }
 0x81d   :  { %2475 = vmatpush3.msra.mxu1 %v3516_v55 }
 0x81e   :  { %2476 = vmatprep.subr.mxu1 %v3786_v42 }
 0x81f   :  { %2477 = vmatpush3.msra.mxu1 %v3520_v56 }
 0x820   :  { %2478 = vmatprep.subr.mxu1 %v3786_v42 }
 0x821   :  { %2479 = vmatpush3.msra.mxu1 %v3524_v57 }
 0x822   :  { %2480 = vmatprep.subr.mxu1 %v3786_v42 }
 0x823   :  { %2481 = vmatpush3.msra.mxu1 %v3528_v58 }
 0x824   :  { %2482 = vmatprep.subr.mxu1 %v3786_v42 }
 0x825   :  { %2483 = vmatpush3.msra.mxu1 %v3532_v59 }
 0x826   :  { %2484 = vmatprep.subr.mxu1 %v3786_v42 }
 0x827   :  { %2485 = vmatpush3.msra.mxu1 %v3534_v60 }
 0x828   :  { %2489 = vmatprep.subr.mxu1 %v3786_v42 }
 0x8c8   :  { %v1437_v23 = vpop.f32.mrf.mxu1 }
 0x8c9   :  { %v1441_v61 = vadd.f32 %v1437_v23, %v3807_v24  ;;  %v3809_v23 = vld [vmem:[#allocation34_spill] sm:$0xff] }
 0x8ca   :  { %v2453_v62 = vpop.f32.mrf.mxu1 }
 0x8cb   :  { %2601 = vtanh.f32 %v1441_v61 }
 0x8d8   :  { %v2602_v14 = vpop.eup %2601 }
 0x8d9   :  { %v1443_v17 = vsub.f32 %v2602_v14, %v3447_v26 }
 0x8db   :  { %v1444_v18 = vmul.f32 %v1443_v17, %v1352_v16  ;;  %v3810_v17 = vld [vmem:[#allocation40_spill] sm:$0xff] }
 0x8dd   :  { %v3580_v19 = vadd.f32 %v1444_v18, %v3447_v26 }
 0x8df   :  { %1549 = vmatmul.mubr.f32.vlgmr.msra.gmra.mxu0 %v3580_v19  ;;  %1447 = vst [vmem:[#allocation13 + $0x20] sm:$0xff] %v3580_v19 }
 0x8e0   :  { %1696 = vmatpush1.msra.mxu0 %v3333_v36  ;;  %1759 = vmatprep.mubr.f32.mxu0 %v3786_v42 }
 0x8e1   :  { %1697 = vmatprep.subr.mxu0 %v3335_v37 }
 0x8e2   :  { %1698 = vmatpush1.msra.mxu0 %v3338_v48 }
 0x8e3   :  { %1699 = vmatprep.subr.mxu0 %v3341_v49 }
 0x8e4   :  { %1700 = vmatpush1.msra.mxu0 %v3344_v50 }
 0x8e5   :  { %1701 = vmatprep.subr.mxu0 %v3347_v51 }
 0x8e6   :  { %1702 = vmatpush1.msra.mxu0 %v3350_v52 }
 0x8e7   :  { %1703 = vmatprep.subr.mxu0 %v3353_v53 }
 0x8e8   :  { %1704 = vmatpush1.msra.mxu0 %v3365_v30 }
 0x8e9   :  { %1705 = vmatprep.subr.mxu0 %v3368_v10 }
 0x8ea   :  { %1706 = vmatpush1.msra.mxu0 %v3371_v41 }
 0x8eb   :  { %1707 = vmatprep.subr.mxu0 %v3374_v43 }
 0x8ec   :  { %1708 = vmatpush1.msra.mxu0 %v3377_v45 }
 0x8ed   :  { %1709 = vmatprep.subr.mxu0 %v3380_v35 }
 0x8ee   :  { %1710 = vmatpush1.msra.mxu0 %v3383_v40 }
 0x8ef   :  { %1711 = vmatprep.subr.mxu0 %v3386_v5 }
 0x8f0   :  { %1712 = vmatpush1.msra.mxu0 %v3389_v39 }
 0x8f1   :  { %1713 = vmatprep.subr.mxu0 %v3392_v38 }
 0x8f2   :  { %1714 = vmatpush1.msra.mxu0 %v3395_v3 }
 0x8f3   :  { %1715 = vmatprep.subr.mxu0 %v3398_v47 }
 0x8f4   :  { %1716 = vmatpush1.msra.mxu0 %v3401_v44 }
 0x8f5   :  { %1717 = vmatprep.subr.mxu0 %v3404_v1 }
 0x8f6   :  { %1718 = vmatpush1.msra.mxu0 %v3407_v0 }
 0x8f7   :  { %1719 = vmatprep.subr.mxu0 %v3410_v6 }
 0x8f8   :  { %1720 = vmatpush1.msra.mxu0 %v3413_v15 }
 0x8f9   :  { %1721 = vmatprep.subr.mxu0 %v3416_v4 }
 0x8fa   :  { %1722 = vmatpush1.msra.mxu0 %v3419_v46 }
 0x8fb   :  { %1723 = vmatprep.subr.mxu0 %v3421_v25 }
 0x8fc   :  { %1724 = vmatpush1.msra.mxu0 %v3423_v7 }
 0x8fd   :  { %1725 = vmatprep.subr.mxu0 %v3426_v8 }
 0x8fe   :  { %1726 = vmatpush1.msra.mxu0 %v3429_v9 }
 0x8ff   :  { %1906 = vmatprep.subr.mxu0 %v3331_v34 }
 0x99f   :  { %v1550_v26 = vpop.f32.mrf.mxu0 }
 0x9a0   :  { %v1555_v21 = vadd.f32 %v1550_v26, %v3808_v63 }
 0x9a1   :  { %v1552_v22 = vpop.f32.mrf.mxu0 }
 0x9a2   :  { %v1556_v24 = vadd.f32 %v1552_v22, %v3809_v23  ;;  %v1557_v34 = vmul.f32 0.5, %v1555_v21 }
 0x9a4   :  { %v1558_v61 = vmul.f32 0.5, %v1556_v24 }
 0x9a6   :  { %2603 = vtanh.f32 %v1558_v61 }
 0x9a7   :  { %2605 = vtanh.f32 %v1557_v34 }
 0x9b3   :  { %v2604_v62 = vpop.eup %2603 }
 0x9b4   :  { %v1562_v2 = vadd.f32 1.0, %v2604_v62  ;;  %v2606_v63 = vpop.eup %2605 }
 0x9b5   :  { %v1561_v22 = vadd.f32 1.0, %v2606_v63 }
 0x9b6   :  { %v1564_v13 = vmul.f32 0.5, %v1562_v2 }
 0x9b7   :  { %v1563_v24 = vmul.f32 0.5, %v1561_v22 }
 0x9b8   :  { %v1565_v14 = vmul.f32 %v1564_v13, %v3580_v19 }
 0x9ba   :  { %2487 = vmatmul.mubr.f32.vlgmr.msra.gmra.mxu1 %v1565_v14 }
 0x9bb   :  { %2490 = vmatpush3.msra.mxu1 %v3434_v11  ;;  %2521 = vmatprep.mubr.msk.f32.mxu1 %vm2761_vm1, %v3786_v42 }
 0x9bc   :  { %2491 = vmatprep.subr.mxu1 %v3786_v42 }
 0x9bd   :  { %2492 = vmatpush3.msra.mxu1 %v3436_v12 }
 0x9be   :  { %2493 = vmatprep.subr.mxu1 %v3786_v42 }
 0x9bf   :  { %2494 = vmatpush3.msra.mxu1 %v3484_v20 }
 0x9c0   :  { %2495 = vmatprep.subr.mxu1 %v3786_v42 }
 0x9c1   :  { %2496 = vmatpush3.msra.mxu1 %v3488_v27 }
 0x9c2   :  { %2497 = vmatprep.subr.mxu1 %v3786_v42 }
 0x9c3   :  { %2498 = vmatpush3.msra.mxu1 %v3492_v28 }
 0x9c4   :  { %2499 = vmatprep.subr.mxu1 %v3786_v42 }
 0x9c5   :  { %2500 = vmatpush3.msra.mxu1 %v3496_v29 }
 0x9c6   :  { %2501 = vmatprep.subr.mxu1 %v3786_v42 }
 0x9c7   :  { %2502 = vmatpush3.msra.mxu1 %v3500_v31 }
 0x9c8   :  { %2503 = vmatprep.subr.mxu1 %v3786_v42 }
 0x9c9   :  { %2504 = vmatpush3.msra.mxu1 %v3504_v32 }
 0x9ca   :  { %2505 = vmatprep.subr.mxu1 %v3786_v42 }
 0x9cb   :  { %2506 = vmatpush3.msra.mxu1 %v3508_v33 }
 0x9cc   :  { %2507 = vmatprep.subr.mxu1 %v3786_v42 }
 0x9cd   :  { %2508 = vmatpush3.msra.mxu1 %v3512_v54 }
 0x9ce   :  { %2509 = vmatprep.subr.mxu1 %v3786_v42 }
 0x9cf   :  { %2510 = vmatpush3.msra.mxu1 %v3516_v55 }
 0x9d0   :  { %2511 = vmatprep.subr.mxu1 %v3786_v42 }
 0x9d1   :  { %2512 = vmatpush3.msra.mxu1 %v3520_v56 }
 0x9d2   :  { %2513 = vmatprep.subr.mxu1 %v3786_v42 }
 0x9d3   :  { %2514 = vmatpush3.msra.mxu1 %v3524_v57 }
 0x9d4   :  { %2515 = vmatprep.subr.mxu1 %v3786_v42 }
 0x9d5   :  { %2516 = vmatpush3.msra.mxu1 %v3528_v58 }
 0x9d6   :  { %2517 = vmatprep.subr.mxu1 %v3786_v42 }
 0x9d7   :  { %2518 = vmatpush3.msra.mxu1 %v3532_v59 }
 0x9d8   :  { %2519 = vmatprep.subr.mxu1 %v3786_v42 }
 0x9d9   :  { %2520 = vmatpush3.msra.mxu1 %v3534_v60 }
 0x9da   :  { %2524 = vmatprep.subr.mxu1 %v3786_v42 }
 0xa7a   :  { %v1648_v16 = vpop.f32.mrf.mxu1 }
 0xa7b   :  { %v1652_v18 = vadd.f32 %v1648_v16, %v3810_v17 }
 0xa7c   :  { %v2488_v26 = vpop.f32.mrf.mxu1 }
 0xa7d   :  { %2607 = vtanh.f32 %v1652_v18 }
 0xa8a   :  { %v2608_v23 = vpop.eup %2607 }
 0xa8b   :  { %v1654_v61 = vsub.f32 %v2608_v23, %v3580_v19 }
 0xa8d   :  { %v1655_v62 = vmul.f32 %v1654_v61, %v1563_v24 }
 0xa8f   :  { %v3657_v2 = vadd.f32 %v1655_v62, %v3580_v19 }
 0xa91   :  { %1760 = vmatmul.mubr.f32.vlgmr.msra.gmra.mxu0 %v3657_v2  ;;  %1658 = vst [vmem:[#allocation13 + $0x28] sm:$0xff] %v3657_v2 }
 0xa92   :  { %1907 = vmatpush1.msra.mxu0 %v3333_v36  ;;  %1970 = vmatprep.mubr.f32.mxu0 %v3786_v42 }
 0xa93   :  { %1908 = vmatprep.subr.mxu0 %v3335_v37  ;;  %v3811_v37 = vld [vmem:[#allocation35_spill] sm:$0xff] }
 0xa94   :  { %1909 = vmatpush1.msra.mxu0 %v3338_v48 }
 0xa95   :  { %1910 = vmatprep.subr.mxu0 %v3341_v49 }
 0xa96   :  { %1911 = vmatpush1.msra.mxu0 %v3344_v50  ;;  %v3812_v50 = vld [vmem:[#allocation36_spill] sm:$0xff] }
 0xa97   :  { %1912 = vmatprep.subr.mxu0 %v3347_v51 }
 0xa98   :  { %1913 = vmatpush1.msra.mxu0 %v3350_v52 }
 0xa99   :  { %1914 = vmatprep.subr.mxu0 %v3353_v53 }
 0xa9a   :  { %1915 = vmatpush1.msra.mxu0 %v3365_v30 }
 0xa9b   :  { %1916 = vmatprep.subr.mxu0 %v3368_v10 }
 0xa9c   :  { %1917 = vmatpush1.msra.mxu0 %v3371_v41 }
 0xa9d   :  { %1918 = vmatprep.subr.mxu0 %v3374_v43 }
 0xa9e   :  { %1919 = vmatpush1.msra.mxu0 %v3377_v45  ;;  %v3813_v45 = vld [vmem:[#allocation39_spill] sm:$0xff] }
 0xa9f   :  { %1920 = vmatprep.subr.mxu0 %v3380_v35  ;;  %v3814_v35 = vld [vmem:[#allocation43_spill] sm:$0xff] }
 0xaa0   :  { %1921 = vmatpush1.msra.mxu0 %v3383_v40  ;;  %v362_v40 = vadd.f32 %v3814_v35, %v3813_v45 }
 0xaa1   :  { %1922 = vmatprep.subr.mxu0 %v3386_v5 }
 0xaa2   :  { %1923 = vmatpush1.msra.mxu0 %v3389_v39 }
 0xaa3   :  { %1924 = vmatprep.subr.mxu0 %v3392_v38 }
 0xaa4   :  { %1925 = vmatpush1.msra.mxu0 %v3395_v3 }
 0xaa5   :  { %1926 = vmatprep.subr.mxu0 %v3398_v47 }
 0xaa6   :  { %1927 = vmatpush1.msra.mxu0 %v3401_v44 }
 0xaa7   :  { %1928 = vmatprep.subr.mxu0 %v3404_v1 }
 0xaa8   :  { %1929 = vmatpush1.msra.mxu0 %v3407_v0 }
 0xaa9   :  { %1930 = vmatprep.subr.mxu0 %v3410_v6 }
 0xaaa   :  { %1931 = vmatpush1.msra.mxu0 %v3413_v15 }
 0xaab   :  { %1932 = vmatprep.subr.mxu0 %v3416_v4  ;;  %v3815_v4 = vld [vmem:[#allocation37_spill] sm:$0xff] }
 0xaac   :  { %1933 = vmatpush1.msra.mxu0 %v3419_v46 }
 0xaad   :  { %1934 = vmatprep.subr.mxu0 %v3421_v25 }
 0xaae   :  { %1935 = vmatpush1.msra.mxu0 %v3423_v7  ;;  %v3816_v7 = vld [vmem:[#allocation38_spill] sm:$0xff] }
 0xaaf   :  { %1936 = vmatprep.subr.mxu0 %v3426_v8 }
 0xab0   :  { %1937 = vmatpush1.msra.mxu0 %v3429_v9 }
 0xb51   :  { %v1761_v36 = vpop.f32.mrf.mxu0 }
 0xb52   :  { %v1766_v48 = vadd.f32 %v1761_v36, %v3811_v37 }
 0xb53   :  { %v1763_v49 = vpop.f32.mrf.mxu0 }
 0xb54   :  { %v1767_v51 = vadd.f32 %v1763_v49, %v3812_v50  ;;  %v1768_v43 = vmul.f32 0.5, %v1766_v48 }
 0xb56   :  { %v1769_v52 = vmul.f32 0.5, %v1767_v51 }
 0xb58   :  { %2609 = vtanh.f32 %v1769_v52 }
 0xb59   :  { %2611 = vtanh.f32 %v1768_v43 }
 0xb65   :  { %v2610_v53 = vpop.eup %2609 }
 0xb66   :  { %v1773_v30 = vadd.f32 1.0, %v2610_v53  ;;  %v2612_v3 = vpop.eup %2611 }
 0xb67   :  { %v1772_v47 = vadd.f32 1.0, %v2612_v3 }
 0xb68   :  { %v1775_v10 = vmul.f32 0.5, %v1773_v30 }
 0xb69   :  { %v1774_v1 = vmul.f32 0.5, %v1772_v47 }
 0xb6a   :  { %v1776_v41 = vmul.f32 %v1775_v10, %v3657_v2 }
 0xb6c   :  { %2522 = vmatmul.mubr.f32.vlgmr.msra.gmra.mxu1 %v1776_v41 }
 0xb6d   :  { %2525 = vmatpush3.msra.mxu1 %v3434_v11  ;;  %2556 = vmatprep.mubr.msk.f32.mxu1 %vm2761_vm1, %v3786_v42 }
 0xb6e   :  { %2526 = vmatprep.subr.mxu1 %v3786_v42 }
 0xb6f   :  { %2527 = vmatpush3.msra.mxu1 %v3436_v12 }
 0xb70   :  { %2528 = vmatprep.subr.mxu1 %v3786_v42 }
 0xb71   :  { %2529 = vmatpush3.msra.mxu1 %v3484_v20 }
 0xb72   :  { %2530 = vmatprep.subr.mxu1 %v3786_v42 }
 0xb73   :  { %2531 = vmatpush3.msra.mxu1 %v3488_v27 }
 0xb74   :  { %2532 = vmatprep.subr.mxu1 %v3786_v42 }
 0xb75   :  { %2533 = vmatpush3.msra.mxu1 %v3492_v28 }
 0xb76   :  { %2534 = vmatprep.subr.mxu1 %v3786_v42 }
 0xb77   :  { %2535 = vmatpush3.msra.mxu1 %v3496_v29 }
 0xb78   :  { %2536 = vmatprep.subr.mxu1 %v3786_v42 }
 0xb79   :  { %2537 = vmatpush3.msra.mxu1 %v3500_v31  ;;  %v3817_v31 = vld [vmem:[#allocation42_spill] sm:$0xff] }
 0xb7a   :  { %2538 = vmatprep.subr.mxu1 %v3786_v42 }
 0xb7b   :  { %2539 = vmatpush3.msra.mxu1 %v3504_v32 }
 0xb7c   :  { %2540 = vmatprep.subr.mxu1 %v3786_v42 }
 0xb7d   :  { %2541 = vmatpush3.msra.mxu1 %v3508_v33 }
 0xb7e   :  { %2542 = vmatprep.subr.mxu1 %v3786_v42 }
 0xb7f   :  { %2543 = vmatpush3.msra.mxu1 %v3512_v54 }
 0xb80   :  { %2544 = vmatprep.subr.mxu1 %v3786_v42 }
 0xb81   :  { %2545 = vmatpush3.msra.mxu1 %v3516_v55 }
 0xb82   :  { %2546 = vmatprep.subr.mxu1 %v3786_v42 }
 0xb83   :  { %2547 = vmatpush3.msra.mxu1 %v3520_v56 }
 0xb84   :  { %2548 = vmatprep.subr.mxu1 %v3786_v42 }
 0xb85   :  { %2549 = vmatpush3.msra.mxu1 %v3524_v57 }
 0xb86   :  { %2550 = vmatprep.subr.mxu1 %v3786_v42 }
 0xb87   :  { %2551 = vmatpush3.msra.mxu1 %v3528_v58 }
 0xb88   :  { %2552 = vmatprep.subr.mxu1 %v3786_v42 }
 0xb89   :  { %2553 = vmatpush3.msra.mxu1 %v3532_v59 }
 0xb8a   :  { %2554 = vmatprep.subr.mxu1 %v3786_v42 }
 0xb8b   :  { %2555 = vmatpush3.msra.mxu1 %v3534_v60 }
 0xc2c   :  { %v1859_v5 = vpop.f32.mrf.mxu1 }
 0xc2d   :  { %v1863_v39 = vadd.f32 %v1859_v5, %v362_v40 }
 0xc2e   :  { %v2523_v38 = vpop.f32.mrf.mxu1 }
 0xc2f   :  { %2613 = vtanh.f32 %v1863_v39 }
 0xc3c   :  { %v2614_v44 = vpop.eup %2613 }
 0xc3d   :  { %v1865_v0 = vsub.f32 %v2614_v44, %v3657_v2 }
 0xc3f   :  { %v1866_v6 = vmul.f32 %v1865_v0, %v1774_v1 }
 0xc41   :  { %v1867_v42 = vadd.f32 %v1866_v6, %v3657_v2 }
 0xc43   :  { %1971 = vmatmul.mubr.f32.vlgmr.msra.gmra.mxu0 %v1867_v42  ;;  %1869 = vst [vmem:[#allocation13 + $0x30] sm:$0xff] %v1867_v42 }
 0xd03   :  { %v1972_v15 = vpop.f32.mrf.mxu0 }
 0xd04   :  { %v1977_v46 = vadd.f32 %v1972_v15, %v3815_v4 }
 0xd05   :  { %v1974_v25 = vpop.f32.mrf.mxu0 }
 0xd06   :  { %v1978_v8 = vadd.f32 %v1974_v25, %v3816_v7  ;;  %v1979_v28 = vmul.f32 0.5, %v1977_v46 }
 0xd08   :  { %v1980_v9 = vmul.f32 0.5, %v1978_v8 }
 0xd0a   :  { %2615 = vtanh.f32 %v1980_v9 }
 0xd0b   :  { %2617 = vtanh.f32 %v1979_v28 }
 0xd17   :  { %v2616_v11 = vpop.eup %2615 }
 0xd18   :  { %v1984_v12 = vadd.f32 1.0, %v2616_v11  ;;  %v2618_v54 = vpop.eup %2617 }
 0xd19   :  { %v1983_v55 = vadd.f32 1.0, %v2618_v54 }
 0xd1a   :  { %v1986_v20 = vmul.f32 0.5, %v1984_v12 }
 0xd1b   :  { %v1985_v57 = vmul.f32 0.5, %v1983_v55 }
 0xd1c   :  { %v1987_v27 = vmul.f32 %v1986_v20, %v1867_v42 }
 0xd1e   :  { %2557 = vmatmul.mubr.f32.vlgmr.msra.gmra.mxu1 %v1987_v27 }
 0xdde   :  { %v2070_v29 = vpop.f32.mrf.mxu1 }
 0xddf   :  { %v2074_v32 = vadd.f32 %v2070_v29, %v3817_v31 }
 0xde0   :  { %v2558_v33 = vpop.f32.mrf.mxu1 }
 0xde1   :  { %2619 = vtanh.f32 %v2074_v32 }
 0xdee   :  { %v2620_v56 = vpop.eup %2619 }
 0xdef   :  { %v2076_v58 = vsub.f32 %v2620_v56, %v1867_v42 }
 0xdf1   :  { %v2077_v59 = vmul.f32 %v2076_v58, %v1985_v57 }
 0xdf3   :  { %v2078_v60 = vadd.f32 %v2077_v59, %v1867_v42 }
 0xdf5   :  { %2080 = vst [vmem:[#allocation13 + $0x38] sm:$0xff] %v2078_v60 }
 0xdf6   :  { %2732 = shalt.err (!%p2729_p1)
}
 0xdf7   :  { %2093 = dma.vmem_to_hbm [thread:$0]  %s2088_s25, 1024, %s3748_s6, [#allocation6], %s2754_s1, %s2754_s1, %s2755_s12  }
 0xdf8   :  { %2747 = dma.done.wait [#allocation6], 1024  }
 0xdf9   :  { %2748 = vsyncadd [#allocation6], 4294966272 }
 0xdfa   :  { %2097 = vsyncpa [#allocation5], 1 }
 0xdfb   :  { %2098 = vsyncpa [#allocation8], 1 }
 0xdfc   :  { %2099 = vsyncpa [#allocation11], 1 }
 0xdfd   :  { %2100 = vsyncpa [#allocation6], 1 }

</bundles_post_ra>
